<compile_context>
chip_gen: v7x
topology: tpu7x:2x2x1
jax: 0.10.0
libtpu: 0.0.40
codegen_flags: <defaults>
</compile_context>

<pallas_src>
import math
from functools import partial

import jax
import jax.numpy as jnp
from jax import lax
from jax.experimental import pallas as pl
from jax.experimental.pallas import tpu as pltpu


def _round_up(x, m):
    return ((x + m - 1) // m) * m


def _pick_batch_block(batch, s_pad, target_m=256):
    """Largest batch block whose packed M = Bblk*S_pad stays near the MXU target,
    while keeping >= 2 grid steps when possible (v7x has 2 TensorCores)."""
    divisors = [d for d in range(1, batch + 1) if batch % d == 0]
    fit = [d for d in divisors if d * s_pad <= max(target_m, s_pad)]
    bblk = max(fit) if fit else 1
    if batch // bblk < 2:
        smaller = [d for d in divisors if batch // d >= 2]
        if smaller:
            bblk = max(smaller)
    return bblk


def _vmem_limit_bytes():
    """Per-chip scoped-VMEM limit: ~75% of physical capacity (v7x: 48 MiB, v5e/v6e: 96 MiB)."""
    try:
        cap = int(pltpu.get_tpu_info().vmem_capacity_bytes)
    except Exception:
        cap = 64 * 1024 * 1024
    return int(0.75 * cap)


def _mha_kernel(x_ref, w_qkv_ref, b_qkv_ref, wo_ref, bo_ref, o_ref,
                q_scr, k_scr, v_scr, m_scr, l_scr, acc_scr, *,
                num_heads, head_dim, seq_len, tile, num_tiles):
    """One (Bblk, S_pad, E) slab of batches per grid step.

    x_ref:     (Bblk, S_pad, E)       input block
    w_qkv_ref: (E, 3E) bf16           [Wq^T*scale | Wk^T | Wv^T]
    b_qkv_ref: (1, 3E) f32            [bq*scale | bk | bv]
    wo_ref:    (E, E)  bf16           Wo^T
    bo_ref:    (1, E)  f32
    o_ref:     (Bblk, S_pad, E)
    q/k/v_scr: (Bblk*H, S_pad, hd)    bf16 VMEM scratch, head-major, written once per step
    m/l_scr:   (Bblk*H, TQ, 1) f32    online-softmax running max / sum
    acc_scr:   (Bblk*H, TQ, hd) f32   online-softmax running context
    """
    bblk, s_pad, embed = x_ref.shape
    H, hd = num_heads, head_dim
    neg_big = jnp.float32(-1e30)
    needs_mask = s_pad != seq_len  # static

    # ---- fused QKV projection: one bf16 MXU matmul, f32 accumulation ----
    x2d = x_ref[...].reshape(bblk * s_pad, embed).astype(jnp.bfloat16)
    qkv = jnp.dot(x2d, w_qkv_ref[...],
                  preferred_element_type=jnp.float32) + b_qkv_ref[0]       # (M, 3E) f32

    # Head-major relayout, staged ONCE per grid step into bf16 VMEM scratch.
    # TODO(synk): this reshape+transpose is XLU relayout traffic; check the bundle dump to see
    # whether it can be absorbed into matmul operand layouts.
    def to_heads(t):                                    # (M, E) -> (Bblk*H, S_pad, hd)
        return (t.reshape(bblk, s_pad, H, hd)
                 .transpose(0, 2, 1, 3)
                 .reshape(bblk * H, s_pad, hd)
                 .astype(jnp.bfloat16))

    q_scr[...] = to_heads(qkv[:, 0 * embed:1 * embed])  # 1/sqrt(hd) already folded into weights
    k_scr[...] = to_heads(qkv[:, 1 * embed:2 * embed])
    v_scr[...] = to_heads(qkv[:, 2 * embed:3 * embed])

    # ---- query tiles: in-kernel loop bounds live ranges to one (G, TQ, *) tile ----
    @pl.loop(0, num_tiles)
    def _q_tile(qi):
        q_start = pl.multiple_of(qi * tile, tile)
        q_blk = q_scr[:, pl.ds(q_start, tile), :]                          # (G, TQ, hd) bf16

        m_scr[...] = jnp.full(m_scr.shape, neg_big, jnp.float32)
        l_scr[...] = jnp.zeros(l_scr.shape, jnp.float32)
        acc_scr[...] = jnp.zeros(acc_scr.shape, jnp.float32)

        # ---- key/value tiles with online (flash-style) softmax ----
        @pl.loop(0, num_tiles)
        def _k_tile(ki):
            k_start = pl.multiple_of(ki * tile, tile)
            k_blk = k_scr[:, pl.ds(k_start, tile), :]                      # (G, TK, hd) bf16
            v_blk = v_scr[:, pl.ds(k_start, tile), :]                      # (G, TK, hd) bf16
            s = jnp.einsum("gqd,gkd->gqk", q_blk, k_blk,
                           preferred_element_type=jnp.float32)             # (G, TQ, TK) f32
            if needs_mask:  # static branch: only compiled in when S was padded
                col = k_start + lax.broadcasted_iota(jnp.int32, s.shape, 2)
                s = jnp.where(col < seq_len, s, neg_big)
            m_prev = m_scr[...]
            m_new = jnp.maximum(m_prev, jnp.max(s, axis=-1, keepdims=True))
            alpha = jnp.exp(m_prev - m_new)
            p = jnp.exp(s - m_new)   # TODO(synk): bf16 exp on v6e/v7x when S >> E
            l_scr[...] = alpha * l_scr[...] + jnp.sum(p, axis=-1, keepdims=True)
            acc_scr[...] = alpha * acc_scr[...] + jnp.einsum(
                "gqk,gkd->gqd", p.astype(jnp.bfloat16), v_blk,
                preferred_element_type=jnp.float32)                        # (G, TQ, hd)
            m_scr[...] = m_new

        # EUP approximate reciprocal for the softmax denominator (frees the VPU divide path).
        ctx = acc_scr[...] * pl.reciprocal(l_scr[...], approx=True)        # (G, TQ, hd) f32
        # concat heads back on the lane axis, then the output projection (bf16 MXU, f32 acc)
        ctx2d = (ctx.reshape(bblk, H, tile, hd)
                    .transpose(0, 2, 1, 3)
                    .reshape(bblk * tile, embed)
                    .astype(jnp.bfloat16))
        out = jnp.dot(ctx2d, wo_ref[...],
                      preferred_element_type=jnp.float32) + bo_ref[0]      # (Bblk*TQ, E) f32
        o_ref[:, pl.ds(q_start, tile), :] = (
            out.reshape(bblk, tile, embed).astype(o_ref.dtype))


def pack_mha_params(params, num_heads):
    """One-time host-side packing of torch nn.MultiheadAttention weights (do NOT redo per call)."""
    w_in = jnp.asarray(params["in_proj_weight"], jnp.float32)     # (3E, E) = [Wq; Wk; Wv]
    b_in = jnp.asarray(params["in_proj_bias"], jnp.float32)       # (3E,)
    w_out = jnp.asarray(params["out_proj_weight"], jnp.float32)   # (E, E)
    b_out = jnp.asarray(params["out_proj_bias"], jnp.float32)     # (E,)
    E = w_out.shape[0]
    hd = E // num_heads
    scale = 1.0 / math.sqrt(hd)
    # Fold the 1/sqrt(hd) query scale into the (static) Q weights/bias -- free at run time.
    scale_vec = jnp.concatenate([jnp.full((E,), scale, jnp.float32),
                                 jnp.ones((2 * E,), jnp.float32)])
    return {
        "w_qkv_t": (w_in.T * scale_vec[None, :]).astype(jnp.bfloat16),   # (E, 3E) bf16
        "b_qkv": (b_in * scale_vec).reshape(1, 3 * E),                   # (1, 3E) f32
        "wo_t": w_out.T.astype(jnp.bfloat16),                            # (E, E)  bf16
        "bo": b_out.reshape(1, E),                                       # (1, E)  f32
    }


def multi_head_attention(x, packed, num_heads, *, block_q=128):
    """x: (B, S, E). packed: output of pack_mha_params. Matches PyTorch MultiHeadAttention.forward."""
    B, S, E = x.shape
    assert E % num_heads == 0, "embed_dim must be divisible by num_heads"
    H = num_heads
    hd = E // H

    # Tile selection: sublane-aligned (multiple of 8; 16 when actually tiling, for bf16 packing).
    s_pad8 = _round_up(S, 8)
    if s_pad8 <= block_q:
        tile = s_pad8                       # single q/k tile
    else:
        tile = max(16, (block_q // 16) * 16)
    S_pad = _round_up(S, tile)
    num_tiles = S_pad // tile

    bblk = _pick_batch_block(B, S_pad)
    grid = (B // bblk,)

    x_in = x if S_pad == S else jnp.pad(x, ((0, 0), (0, S_pad - S), (0, 0)))

    # Static weights/biases: whole-array VMEM residency (loaded once, single-buffered).
    vmem_full = pl.BlockSpec(memory_space=pltpu.MemorySpace.VMEM)

    flops = (2 * B * S_pad * E * 3 * E            # fused QKV projection
             + 2 * B * S_pad * E * E              # output projection
             + 4 * B * H * S_pad * S_pad * hd)    # QK^T and PV
    cost = pl.CostEstimate(
        flops=int(flops),
        transcendentals=int(B * H * S_pad * S_pad),
        bytes_accessed=int(4 * 2 * B * S_pad * E + 2 * (3 * E * E + E * E) + 4 * 4 * E))

    kernel = partial(_mha_kernel, num_heads=H, head_dim=hd, seq_len=S,
                     tile=tile, num_tiles=num_tiles)

    out = pl.pallas_call(
        kernel,
        out_shape=jax.ShapeDtypeStruct((B, S_pad, E), x.dtype),
        grid_spec=pltpu.PrefetchScalarGridSpec(
            num_scalar_prefetch=0,
            grid=grid,
            in_specs=[
                pl.BlockSpec((bblk, S_pad, E), lambda b: (b, 0, 0)),  # x, pipelined over batch
                vmem_full,   # fused Wqkv^T (E, 3E) bf16
                vmem_full,   # fused b_qkv  (1, 3E) f32
                vmem_full,   # Wo^T         (E, E)  bf16
                vmem_full,   # bo           (1, E)  f32
            ],
            out_specs=pl.BlockSpec((bblk, S_pad, E), lambda b: (b, 0, 0)),
            scratch_shapes=[
                pltpu.VMEM((bblk * H, S_pad, hd), jnp.bfloat16),   # q (head-major)
                pltpu.VMEM((bblk * H, S_pad, hd), jnp.bfloat16),   # k
                pltpu.VMEM((bblk * H, S_pad, hd), jnp.bfloat16),   # v
                pltpu.VMEM((bblk * H, tile, 1), jnp.float32),      # running max m
                pltpu.VMEM((bblk * H, tile, 1), jnp.float32),      # running sum l
                pltpu.VMEM((bblk * H, tile, hd), jnp.float32),     # running context acc
            ],
        ),
        compiler_params=pltpu.CompilerParams(
            dimension_semantics=("parallel",),
            vmem_limit_bytes=_vmem_limit_bytes(),
        ),
        cost_estimate=cost,
    )(x_in, packed["w_qkv_t"], packed["b_qkv"], packed["wo_t"], packed["bo"])

    return out if S_pad == S else out[:, :S, :]


def _reference(x, params, num_heads):
    """Plain-JAX mirror of torch.nn.MultiheadAttention self-attention forward (f32)."""
    B, S, E = x.shape
    hd = E // num_heads
    w_in, b_in = params["in_proj_weight"], params["in_proj_bias"]
    q = x @ w_in[0 * E:1 * E].T + b_in[0 * E:1 * E]
    k = x @ w_in[1 * E:2 * E].T + b_in[1 * E:2 * E]
    v = x @ w_in[2 * E:3 * E].T + b_in[2 * E:3 * E]
    q = q.reshape(B, S, num_heads, hd).transpose(0, 2, 1, 3)
    k = k.reshape(B, S, num_heads, hd).transpose(0, 2, 1, 3)
    v = v.reshape(B, S, num_heads, hd).transpose(0, 2, 1, 3)
    scores = jnp.einsum("bhqd,bhkd->bhqk", q, k) / math.sqrt(hd)
    p = jax.nn.softmax(scores, axis=-1)
    o = jnp.einsum("bhqk,bhkd->bhqd", p, v).transpose(0, 2, 1, 3).reshape(B, S, E)
    return o @ params["out_proj_weight"].T + params["out_proj_bias"]


if __name__ == "__main__":
    key = jax.random.PRNGKey(0)

    def make_case(case_key, B, S, E):
        kx, kw, kb, ko, kob = jax.random.split(case_key, 5)
        x = jax.random.normal(kx, (B, S, E), dtype=jnp.float32)
        params = {
            "in_proj_weight":  jax.random.normal(kw, (3 * E, E), dtype=jnp.float32) * 0.05,
            "in_proj_bias":    jax.random.normal(kb, (3 * E,), dtype=jnp.float32) * 0.02,
            "out_proj_weight": jax.random.normal(ko, (E, E), dtype=jnp.float32) * 0.05,
            "out_proj_bias":   jax.random.normal(kob, (E,), dtype=jnp.float32) * 0.02,
        }
        return x, params

    # (B, S, E, H, block_q): exercise the single-tile, batch-packed+masked, and multi-tile paths.
    cases = [
        (2, 8, 128, 4, 128),    # tiny slab: Bblk=1, single tile, no mask
        (8, 10, 128, 4, 128),   # batch-packed (Bblk=4) + padded-key mask
        (2, 40, 128, 4, 16),    # multi-tile flash-softmax path (+mask)
    ]
    case_keys = jax.random.split(key, len(cases))
    for case_key, (B, S, E, H, bq) in zip(case_keys, cases):
        x, params = make_case(case_key, B, S, E)
        packed = pack_mha_params(params, H)
        out = multi_head_attention(x, packed, H, block_q=bq)
        jax.block_until_ready(out)
        ref = _reference(x, params, H)
        assert out.shape == (B, S, E)
        max_err = float(jnp.max(jnp.abs(out - ref)))
        # bf16 MXU operands + approximate-reciprocal softmax denominator => looser than exact f32;
        # genuine bugs produce errors orders of magnitude larger.
        assert jnp.allclose(out, ref, atol=5e-2, rtol=5e-2), (
            f"Pallas kernel mismatch vs reference for {(B, S, E, H)}: max abs err {max_err}")

    print("KERNEL_OK")
</pallas_src>

<mosaic_0001>
module attributes {stable_mosaic.version = 11 : i64} {
  func.func @_mha_kernel(%arg0: i32, %arg1: memref<1x8x128xf32, #tpu.memory_space<vmem>>, %arg2: memref<128x384xbf16, #tpu.memory_space<vmem>>, %arg3: memref<1x384xf32, #tpu.memory_space<vmem>>, %arg4: memref<128x128xbf16, #tpu.memory_space<vmem>>, %arg5: memref<1x128xf32, #tpu.memory_space<vmem>>, %arg6: memref<1x8x128xf32, #tpu.memory_space<vmem>>, %arg7: memref<4x8x32xbf16, #tpu.memory_space<vmem>>, %arg8: memref<4x8x32xbf16, #tpu.memory_space<vmem>>, %arg9: memref<4x8x32xbf16, #tpu.memory_space<vmem>>, %arg10: memref<4x8x1xf32, #tpu.memory_space<vmem>>, %arg11: memref<4x8x1xf32, #tpu.memory_space<vmem>>, %arg12: memref<4x8x32xf32, #tpu.memory_space<vmem>>) attributes {dimension_semantics = [#tpu.dimension_semantics<parallel>], iteration_bounds = array<i64: 2>, scalar_prefetch = 0 : i64, scratch_operands = 6 : i64, tpu.core_type = #tpu.core_type<tc>, window_params = [{transform_indices = @transform_0, window_bounds = array<i64: 1, 8, 128>}, {pipeline_mode = #tpu.pipeline_mode<synchronous>, transform_indices = @transform_1, window_bounds = array<i64: 128, 384>}, {pipeline_mode = #tpu.pipeline_mode<synchronous>, transform_indices = @transform_2, window_bounds = array<i64: 1, 384>}, {pipeline_mode = #tpu.pipeline_mode<synchronous>, transform_indices = @transform_3, window_bounds = array<i64: 128, 128>}, {pipeline_mode = #tpu.pipeline_mode<synchronous>, transform_indices = @transform_4, window_bounds = array<i64: 1, 128>}, {transform_indices = @transform_5, window_bounds = array<i64: 1, 8, 128>}]} {
    %c0 = arith.constant 0 : index
    %c0_0 = arith.constant 0 : index
    %c0_1 = arith.constant 0 : index
    %0 = vector.load %arg1[%c0, %c0_0, %c0_1] : memref<1x8x128xf32, #tpu.memory_space<vmem>>, vector<1x8x128xf32>
    %1 = vector.shape_cast %0 : vector<1x8x128xf32> to vector<8x128xf32>
    %2 = arith.truncf %1 : vector<8x128xf32> to vector<8x128xbf16>
    %c0_2 = arith.constant 0 : index
    %c0_3 = arith.constant 0 : index
    %3 = vector.load %arg2[%c0_2, %c0_3] : memref<128x384xbf16, #tpu.memory_space<vmem>>, vector<128x384xbf16>
    %cst = arith.constant dense<0.000000e+00> : vector<8x384xf32>
    %4 = tpu.matmul %2, %3, %cst {dimension_numbers = #tpu.dot_dimension_numbers<[1], [0], [0], [1], [0, 0, 1, 1], [], []>} : vector<8x128xbf16>, vector<128x384xbf16>, vector<8x384xf32> -> vector<8x384xf32>
    %c0_4 = arith.constant 0 : index
    %c0_5 = arith.constant 0 : index
    %5 = vector.load %arg3[%c0_4, %c0_5] : memref<1x384xf32, #tpu.memory_space<vmem>>, vector<1x384xf32>
    %6 = vector.shape_cast %5 : vector<1x384xf32> to vector<384xf32>
    %7 = vector.shape_cast %6 : vector<384xf32> to vector<1x384xf32>
    %8 = vector.broadcast %7 : vector<1x384xf32> to vector<8x384xf32>
    %9 = arith.addf %4, %8 : vector<8x384xf32>
    %10 = vector.extract_strided_slice %9 {offsets = [0, 0], sizes = [8, 128], strides = [1, 1]} : vector<8x384xf32> to vector<8x128xf32>
    %11 = vector.shape_cast %10 : vector<8x128xf32> to vector<1x8x4x32xf32>
    %12 = tpu.transpose %11, [0, 2, 1, 3] : vector<1x8x4x32xf32> -> vector<1x4x8x32xf32>
    %13 = vector.shape_cast %12 : vector<1x4x8x32xf32> to vector<4x8x32xf32>
    %14 = arith.truncf %13 : vector<4x8x32xf32> to vector<4x8x32xbf16>
    %c0_6 = arith.constant 0 : index
    %c0_7 = arith.constant 0 : index
    %c0_8 = arith.constant 0 : index
    %15 = vector.load %arg7[%c0_6, %c0_7, %c0_8] : memref<4x8x32xbf16, #tpu.memory_space<vmem>>, vector<4x8x32xbf16>
    tpu.vector_store %arg7[%c0_6, %c0_7, %c0_8], %14 {strides = array<i32>} : memref<4x8x32xbf16, #tpu.memory_space<vmem>>, vector<4x8x32xbf16>,
    %16 = vector.extract_strided_slice %9 {offsets = [0, 128], sizes = [8, 128], strides = [1, 1]} : vector<8x384xf32> to vector<8x128xf32>
    %17 = vector.shape_cast %16 : vector<8x128xf32> to vector<1x8x4x32xf32>
    %18 = tpu.transpose %17, [0, 2, 1, 3] : vector<1x8x4x32xf32> -> vector<1x4x8x32xf32>
    %19 = vector.shape_cast %18 : vector<1x4x8x32xf32> to vector<4x8x32xf32>
    %20 = arith.truncf %19 : vector<4x8x32xf32> to vector<4x8x32xbf16>
    %c0_9 = arith.constant 0 : index
    %c0_10 = arith.constant 0 : index
    %c0_11 = arith.constant 0 : index
    %21 = vector.load %arg8[%c0_9, %c0_10, %c0_11] : memref<4x8x32xbf16, #tpu.memory_space<vmem>>, vector<4x8x32xbf16>
    tpu.vector_store %arg8[%c0_9, %c0_10, %c0_11], %20 {strides = array<i32>} : memref<4x8x32xbf16, #tpu.memory_space<vmem>>, vector<4x8x32xbf16>,
    %22 = vector.extract_strided_slice %9 {offsets = [0, 256], sizes = [8, 128], strides = [1, 1]} : vector<8x384xf32> to vector<8x128xf32>
    %23 = vector.shape_cast %22 : vector<8x128xf32> to vector<1x8x4x32xf32>
    %24 = tpu.transpose %23, [0, 2, 1, 3] : vector<1x8x4x32xf32> -> vector<1x4x8x32xf32>
    %25 = vector.shape_cast %24 : vector<1x4x8x32xf32> to vector<4x8x32xf32>
    %26 = arith.truncf %25 : vector<4x8x32xf32> to vector<4x8x32xbf16>
    %c0_12 = arith.constant 0 : index
    %c0_13 = arith.constant 0 : index
    %c0_14 = arith.constant 0 : index
    %27 = vector.load %arg9[%c0_12, %c0_13, %c0_14] : memref<4x8x32xbf16, #tpu.memory_space<vmem>>, vector<4x8x32xbf16>
    tpu.vector_store %arg9[%c0_12, %c0_13, %c0_14], %26 {strides = array<i32>} : memref<4x8x32xbf16, #tpu.memory_space<vmem>>, vector<4x8x32xbf16>,
    %cst_15 = arith.constant -1.000000e+30 : f32
    %c0_i32 = arith.constant 0 : i32
    %c1_i32 = arith.constant 1 : i32
    %28 = arith.muli %c0_i32, %c1_i32 : i32
    %c0_i32_16 = arith.constant 0 : i32
    %29 = arith.addi %c0_i32_16, %28 : i32
    %c8_i32 = arith.constant 8 : i32
    %30 = arith.muli %29, %c8_i32 : i32
    %31 = tpu.assume_multiple %30, 8 : i32
    %c0_17 = arith.constant 0 : index
    %32 = arith.index_cast %31 : i32 to index
    %c0_18 = arith.constant 0 : index
    %33 = vector.load %arg7[%c0_17, %32, %c0_18] : memref<4x8x32xbf16, #tpu.memory_space<vmem>>, vector<4x8x32xbf16>
    %34 = vector.broadcast %cst_15 : f32 to vector<4x8x1xf32>
    %c0_19 = arith.constant 0 : index
    %c0_20 = arith.constant 0 : index
    %c0_21 = arith.constant 0 : index
    %35 = vector.load %arg10[%c0_19, %c0_20, %c0_21] : memref<4x8x1xf32, #tpu.memory_space<vmem>>, vector<4x8x1xf32>
    tpu.vector_store %arg10[%c0_19, %c0_20, %c0_21], %34 {strides = array<i32>} : memref<4x8x1xf32, #tpu.memory_space<vmem>>, vector<4x8x1xf32>,
    %cst_22 = arith.constant 0.000000e+00 : f32
    %36 = vector.broadcast %cst_22 : f32 to vector<4x8x1xf32>
    %c0_23 = arith.constant 0 : index
    %c0_24 = arith.constant 0 : index
    %c0_25 = arith.constant 0 : index
    %37 = vector.load %arg11[%c0_23, %c0_24, %c0_25] : memref<4x8x1xf32, #tpu.memory_space<vmem>>, vector<4x8x1xf32>
    tpu.vector_store %arg11[%c0_23, %c0_24, %c0_25], %36 {strides = array<i32>} : memref<4x8x1xf32, #tpu.memory_space<vmem>>, vector<4x8x1xf32>,
    %cst_26 = arith.constant 0.000000e+00 : f32
    %38 = vector.broadcast %cst_26 : f32 to vector<4x8x32xf32>
    %c0_27 = arith.constant 0 : index
    %c0_28 = arith.constant 0 : index
    %c0_29 = arith.constant 0 : index
    %39 = vector.load %arg12[%c0_27, %c0_28, %c0_29] : memref<4x8x32xf32, #tpu.memory_space<vmem>>, vector<4x8x32xf32>
    tpu.vector_store %arg12[%c0_27, %c0_28, %c0_29], %38 {strides = array<i32>} : memref<4x8x32xf32, #tpu.memory_space<vmem>>, vector<4x8x32xf32>,
    %c0_i32_30 = arith.constant 0 : i32
    %c1_i32_31 = arith.constant 1 : i32
    %40 = arith.muli %c0_i32_30, %c1_i32_31 : i32
    %c0_i32_32 = arith.constant 0 : i32
    %41 = arith.addi %c0_i32_32, %40 : i32
    %c8_i32_33 = arith.constant 8 : i32
    %42 = arith.muli %41, %c8_i32_33 : i32
    %43 = tpu.assume_multiple %42, 8 : i32
    %c0_34 = arith.constant 0 : index
    %44 = arith.index_cast %43 : i32 to index
    %c0_35 = arith.constant 0 : index
    %45 = vector.load %arg8[%c0_34, %44, %c0_35] : memref<4x8x32xbf16, #tpu.memory_space<vmem>>, vector<4x8x32xbf16>
    %c0_36 = arith.constant 0 : index
    %46 = arith.index_cast %43 : i32 to index
    %c0_37 = arith.constant 0 : index
    %47 = vector.load %arg9[%c0_36, %46, %c0_37] : memref<4x8x32xbf16, #tpu.memory_space<vmem>>, vector<4x8x32xbf16>
    "tpu.trace_start"() <{level = 10 : i32, message = "gqd,gkd->gqk"}> : () -> ()
    %cst_38 = arith.constant dense<0.000000e+00> : vector<4x8x8xf32>
    %48 = tpu.matmul %33, %45, %cst_38 {dimension_numbers = #tpu.dot_dimension_numbers<[2], [2], [1], [1], [0, 0, 0, 1, 1, 1], [0], [0]>} : vector<4x8x32xbf16>, vector<4x8x32xbf16>, vector<4x8x8xf32> -> vector<4x8x8xf32>
    "tpu.trace_stop"() : () -> ()
    %c0_39 = arith.constant 0 : index
    %c0_40 = arith.constant 0 : index
    %c0_41 = arith.constant 0 : index
    %49 = vector.load %arg10[%c0_39, %c0_40, %c0_41] : memref<4x8x1xf32, #tpu.memory_space<vmem>>, vector<4x8x1xf32>
    %cst_42 = arith.constant dense<0xFF800000> : vector<4x8xf32>
    %50 = vector.multi_reduction <maximumf>, %48, %cst_42 [2] : vector<4x8x8xf32> to vector<4x8xf32>
    %51 = vector.shape_cast %50 : vector<4x8xf32> to vector<4x8x1xf32>
    %52 = arith.maximumf %49, %51 : vector<4x8x1xf32>
    %53 = arith.subf %49, %52 : vector<4x8x1xf32>
    %54 = math.exp %53 : vector<4x8x1xf32>
    %55 = vector.broadcast %52 : vector<4x8x1xf32> to vector<4x8x8xf32>
    %56 = arith.subf %48, %55 : vector<4x8x8xf32>
    %57 = math.exp %56 : vector<4x8x8xf32>
    %c0_43 = arith.constant 0 : index
    %c0_44 = arith.constant 0 : index
    %c0_45 = arith.constant 0 : index
    %58 = vector.load %arg11[%c0_43, %c0_44, %c0_45] : memref<4x8x1xf32, #tpu.memory_space<vmem>>, vector<4x8x1xf32>
    %59 = arith.mulf %54, %58 : vector<4x8x1xf32>
    %cst_46 = arith.constant dense<0.000000e+00> : vector<4x8xf32>
    %60 = vector.multi_reduction <add>, %57, %cst_46 [2] : vector<4x8x8xf32> to vector<4x8xf32>
    %61 = vector.shape_cast %60 : vector<4x8xf32> to vector<4x8x1xf32>
    %62 = arith.addf %59, %61 : vector<4x8x1xf32>
    %c0_47 = arith.constant 0 : index
    %c0_48 = arith.constant 0 : index
    %c0_49 = arith.constant 0 : index
    %63 = vector.load %arg11[%c0_47, %c0_48, %c0_49] : memref<4x8x1xf32, #tpu.memory_space<vmem>>, vector<4x8x1xf32>
    tpu.vector_store %arg11[%c0_47, %c0_48, %c0_49], %62 {strides = array<i32>} : memref<4x8x1xf32, #tpu.memory_space<vmem>>, vector<4x8x1xf32>,
    %c0_50 = arith.constant 0 : index
    %c0_51 = arith.constant 0 : index
    %c0_52 = arith.constant 0 : index
    %64 = vector.load %arg12[%c0_50, %c0_51, %c0_52] : memref<4x8x32xf32, #tpu.memory_space<vmem>>, vector<4x8x32xf32>
    %65 = vector.broadcast %54 : vector<4x8x1xf32> to vector<4x8x32xf32>
    %66 = arith.mulf %65, %64 : vector<4x8x32xf32>
    %67 = arith.truncf %57 : vector<4x8x8xf32> to vector<4x8x8xbf16>
    "tpu.trace_start"() <{level = 10 : i32, message = "gqk,gkd->gqd"}> : () -> ()
    %cst_53 = arith.constant dense<0.000000e+00> : vector<4x8x32xf32>
    %68 = tpu.matmul %67, %47, %cst_53 {dimension_numbers = #tpu.dot_dimension_numbers<[2], [1], [1], [2], [0, 0, 0, 1, 1, 2], [0], [0]>} : vector<4x8x8xbf16>, vector<4x8x32xbf16>, vector<4x8x32xf32> -> vector<4x8x32xf32>
    "tpu.trace_stop"() : () -> ()
    %69 = arith.addf %66, %68 : vector<4x8x32xf32>
    %c0_54 = arith.constant 0 : index
    %c0_55 = arith.constant 0 : index
    %c0_56 = arith.constant 0 : index
    %70 = vector.load %arg12[%c0_54, %c0_55, %c0_56] : memref<4x8x32xf32, #tpu.memory_space<vmem>>, vector<4x8x32xf32>
    tpu.vector_store %arg12[%c0_54, %c0_55, %c0_56], %69 {strides = array<i32>} : memref<4x8x32xf32, #tpu.memory_space<vmem>>, vector<4x8x32xf32>,
    %c0_57 = arith.constant 0 : index
    %c0_58 = arith.constant 0 : index
    %c0_59 = arith.constant 0 : index
    %71 = vector.load %arg10[%c0_57, %c0_58, %c0_59] : memref<4x8x1xf32, #tpu.memory_space<vmem>>, vector<4x8x1xf32>
    tpu.vector_store %arg10[%c0_57, %c0_58, %c0_59], %52 {strides = array<i32>} : memref<4x8x1xf32, #tpu.memory_space<vmem>>, vector<4x8x1xf32>,
    %c1_i32_60 = arith.constant 1 : i32
    %c0_61 = arith.constant 0 : index
    %c0_62 = arith.constant 0 : index
    %c0_63 = arith.constant 0 : index
    %72 = vector.load %arg12[%c0_61, %c0_62, %c0_63] : memref<4x8x32xf32, #tpu.memory_space<vmem>>, vector<4x8x32xf32>
    %c0_64 = arith.constant 0 : index
    %c0_65 = arith.constant 0 : index
    %c0_66 = arith.constant 0 : index
    %73 = vector.load %arg11[%c0_64, %c0_65, %c0_66] : memref<4x8x1xf32, #tpu.memory_space<vmem>>, vector<4x8x1xf32>
    %74 = tpu.reciprocal %73 {approx = true} : vector<4x8x1xf32> -> vector<4x8x1xf32>
    %75 = vector.broadcast %74 : vector<4x8x1xf32> to vector<4x8x32xf32>
    %76 = arith.mulf %72, %75 : vector<4x8x32xf32>
    %77 = vector.shape_cast %76 : vector<4x8x32xf32> to vector<1x4x8x32xf32>
    %78 = tpu.transpose %77, [0, 2, 1, 3] : vector<1x4x8x32xf32> -> vector<1x8x4x32xf32>
    %79 = vector.shape_cast %78 : vector<1x8x4x32xf32> to vector<8x128xf32>
    %80 = arith.truncf %79 : vector<8x128xf32> to vector<8x128xbf16>
    %c0_67 = arith.constant 0 : index
    %c0_68 = arith.constant 0 : index
    %81 = vector.load %arg4[%c0_67, %c0_68] : memref<128x128xbf16, #tpu.memory_space<vmem>>, vector<128x128xbf16>
    %cst_69 = arith.constant dense<0.000000e+00> : vector<8x128xf32>
    %82 = tpu.matmul %80, %81, %cst_69 {dimension_numbers = #tpu.dot_dimension_numbers<[1], [0], [0], [1], [0, 0, 1, 1], [], []>} : vector<8x128xbf16>, vector<128x128xbf16>, vector<8x128xf32> -> vector<8x128xf32>
    %c0_70 = arith.constant 0 : index
    %c0_71 = arith.constant 0 : index
    %83 = vector.load %arg5[%c0_70, %c0_71] : memref<1x128xf32, #tpu.memory_space<vmem>>, vector<1x128xf32>
    %84 = vector.shape_cast %83 : vector<1x128xf32> to vector<128xf32>
    %85 = vector.shape_cast %84 : vector<128xf32> to vector<1x128xf32>
    %86 = vector.broadcast %85 : vector<1x128xf32> to vector<8x128xf32>
    %87 = arith.addf %82, %86 : vector<8x128xf32>
    %88 = vector.shape_cast %87 : vector<8x128xf32> to vector<1x8x128xf32>
    %c0_72 = arith.constant 0 : index
    %89 = arith.index_cast %31 : i32 to index
    %c0_73 = arith.constant 0 : index
    %90 = vector.load %arg6[%c0_72, %89, %c0_73] : memref<1x8x128xf32, #tpu.memory_space<vmem>>, vector<1x8x128xf32>
    tpu.vector_store %arg6[%c0_72, %89, %c0_73], %88 {strides = array<i32>} : memref<1x8x128xf32, #tpu.memory_space<vmem>>, vector<1x8x128xf32>,
    %c1_i32_74 = arith.constant 1 : i32
    return
  }
  func.func @transform_0(%arg0: i32) -> (i32, i32, i32) {
    %c0_i32 = arith.constant 0 : i32
    %c0_i32_0 = arith.constant 0 : i32
    %c0_i32_1 = arith.constant 0 : i32
    return %arg0, %c0_i32, %c0_i32_0 : i32, i32, i32
  }
  func.func @transform_1(%arg0: i32) -> (i32, i32) {
    %c0_i32 = arith.constant 0 : i32
    %c0_i32_0 = arith.constant 0 : i32
    %c0_i32_1 = arith.constant 0 : i32
    return %c0_i32, %c0_i32_0 : i32, i32
  }
  func.func @transform_2(%arg0: i32) -> (i32, i32) {
    %c0_i32 = arith.constant 0 : i32
    %c0_i32_0 = arith.constant 0 : i32
    %c0_i32_1 = arith.constant 0 : i32
    return %c0_i32, %c0_i32_0 : i32, i32
  }
  func.func @transform_3(%arg0: i32) -> (i32, i32) {
    %c0_i32 = arith.constant 0 : i32
    %c0_i32_0 = arith.constant 0 : i32
    %c0_i32_1 = arith.constant 0 : i32
    return %c0_i32, %c0_i32_0 : i32, i32
  }
  func.func @transform_4(%arg0: i32) -> (i32, i32) {
    %c0_i32 = arith.constant 0 : i32
    %c0_i32_0 = arith.constant 0 : i32
    %c0_i32_1 = arith.constant 0 : i32
    return %c0_i32, %c0_i32_0 : i32, i32
  }
  func.func @transform_5(%arg0: i32) -> (i32, i32, i32) {
    %c0_i32 = arith.constant 0 : i32
    %c0_i32_0 = arith.constant 0 : i32
    %c0_i32_1 = arith.constant 0 : i32
    return %arg0, %c0_i32, %c0_i32_0 : i32, i32, i32
  }
}

</mosaic_0001>

<bundles_post_ra>
// kernel: tpu_custom_call.1
= control target key start
LH: loop header
LB: loop body
LE: loop exit
PB: predicated region body
PF: predicated region fallthrough
CT: control target
= control target key end

     0   :  { %10 = vsyncpa [#allocation9], 0  ;;  %s2979_s0 = inlined_call_operand.hbm [shape: f32[2,8,128], index: 0, kind: input, shape index: {}]   ;;  %s2980_s1 = inlined_call_operand.hbm [shape: bf16[128,384], index: 1, kind: input, shape index: {}]   ;;  %s2981_s2 = inlined_call_operand.vmem [shape: f32[1,384], index: 2, kind: input, shape index: {}]   ;;  %s2982_s3 = inlined_call_operand.hbm [shape: bf16[128,128], index: 3, kind: input, shape index: {}]   ;;  %s2983_s4 = inlined_call_operand.vmem [shape: f32[1,128], index: 4, kind: input, shape index: {}]   ;;  %s2984_s5 = inlined_call_operand.hbm [shape: f32[2,8,128], index: 5, kind: output, shape index: {}]  }
   0x1   :  { %12 = vsyncpa [#allocation9 + $0x1], 0 }
   0x2   :  { %13 = vsyncpa [#allocation12], 0 }
   0x3   :  { %14 = vsyncpa [#allocation10], 0 }
   0x4   :  { %16 = vsyncpa [#allocation10 + $0x1], 0  ;;  %s2468_s18 = smov 0   ;;  %s2470_s19 = smov 0  }
   0x5   :  { %s2472_s20 = smov 0   ;;  %s2474_s21 = smov 0  }
   0x6 LB: > { %s2489_s22 = sadd.s32 4294967295, %s2419_s21   ;;  %s1930_s23 = sadd.s32 4294967294, %s2419_s21   ;;  %s2419_s21 = sphi %s2474_s21, %s3004_s21   ;;  %s2415_s20 = sphi %s2472_s20, %s3003_s20   ;;  %s2411_s19 = sphi %s2470_s19, %s3002_s19   ;;  %s2407_s18 = sphi %s2468_s18, %s3001_s18  }
   0x7   : > { %p42_p0 = scmp.ne.s32.totalorder %s2411_s19, %s2407_s18  ;;  %p2985_p1 = scmp.eq.s32.totalorder %s2489_s22, 0 }
   0x8   : > { %p156_p3 = scmp.eq.s32.totalorder %s1930_s23, 1  ;;  %p1931_p5 = scmp.ge.s32.totalorder %s2419_s21, 1 }
   0x9   : > { %p2498_p4 = por %p2985_p1, %p42_p0  ;;  %p163_p7 = scmp.lt.s32.totalorder %s2419_s21, 3 }
   0xa   : > { %p2503_p6 = por %p156_p3, %p42_p0  ;;  %s2421_s27 = smov [#allocation11]  }
   0xb   : > { %s2988_s24 = scalar_select %p2498_p4, 1, 0 }
   0xc   : > { %s2989_s25 = scalar_select %p2503_p6, 1, 0 }
   0xd   : > { %p2508_p8 = pnand %p1931_p5, %p163_p7  ;;  %s175_s28 = sshll.u32 %s2421_s27, 4  ;;  %s2512_s28 = int_to_ptr.vmem [resolvable:$true] %s175_s28 }
   0xe   : > { %s2422_s30 = smov [#allocation13]   ;;  %s2263_s9 = scalar_lea.hbm %s2980_s1, 3072 }
   0xf   : > { %p2129_p9 = pneg %p2508_p8  ;;  %s191_s6 = sshll.u32 %s2422_s30, 4  ;;  %s2523_s6 = int_to_ptr.vmem [resolvable:$true] %s191_s6 }
  0x10   : > { %p2264_p12 = scmp.ne.s32.totalorder %s2980_s1, %s2263_s9  ;;  %p2270_p5 = scmp.lt.u32.totalorder %s2263_s9, %s2980_s1 }
  0x11   : > { %p2519_p11 = pnand %p2129_p9, %p2985_p1 }
  0x13   : > { %p2265_p13 = pneg %p2519_p11 }
  0x15   : > { %p2266_p0 = pnand %p2265_p13, %p2264_p12 }
  0x17   : > { %p2267_p3 = pneg %p2266_p0 }
  0x19   : > { %p2272_p7 = pnand %p2270_p5, %p2267_p3 }
  0x1b   : > { %2275 = shalt.err (!%p2272_p7)
}
  0x1c   : > { %s2276_s14 = scalar_lea.vmem %s2512_s28, 3072  ;;  %p2284_p2 = scmp.lt.s32.totalorder %s2512_s28, %s2512_s28 }
  0x1d   : > { %p2277_p9 = scmp.ne.s32.totalorder %s2512_s28, %s2276_s14  ;;  %p2285_p12 = scmp.lt.s32.totalorder %s2276_s14, %s2276_s14 }
  0x1f   : > { %p2279_p10 = pnand %p2277_p9, %p2265_p13  ;;  %p2286_p0 = por %p2285_p12, %p2284_p2 }
  0x21   : > { %p2280_p1 = pneg %p2279_p10 }
  0x23   : > { %p2287_p6 = pnand %p2286_p0, %p2280_p1 }
  0x25   : > { %2290 = shalt.err (!%p2287_p6)
}
  0x26   : > { %s2423_s15 = smov 192   ;;  %s2424_s16 = smov 12  }
  0x27   : > { %2132 = dma.hbm_to_vmem [thread:$0]  (!%p2519_p11), %s2980_s1, 3072, %s2512_s28, [#allocation12], %s2423_s15, %s2423_s15, %s2424_s16  }
  0x28   : > { %s2291_s7 = scalar_lea.hbm %s2982_s3, 1024 }
  0x29   : > { %p2292_p2 = scmp.ne.s32.totalorder %s2982_s3, %s2291_s7  ;;  %p2298_p10 = scmp.lt.u32.totalorder %s2291_s7, %s2982_s3 }
  0x2b   : > { %p2294_p1 = pnand %p2292_p2, %p2265_p13 }
  0x2d   : > { %p2295_p6 = pneg %p2294_p1 }
  0x2f   : > { %p2300_p3 = pnand %p2298_p10, %p2295_p6 }
  0x31   : > { %2303 = shalt.err (!%p2300_p3)
}
  0x32   : > { %s2304_s28 = scalar_lea.vmem %s2523_s6, 1024  ;;  %p2312_p12 = scmp.lt.s32.totalorder %s2523_s6, %s2523_s6 }
  0x33   : > { %p2305_p5 = scmp.ne.s32.totalorder %s2523_s6, %s2304_s28  ;;  %p2313_p0 = scmp.lt.s32.totalorder %s2304_s28, %s2304_s28 }
  0x35   : > { %p2307_p7 = pnand %p2305_p5, %p2265_p13  ;;  %p2314_p2 = por %p2313_p0, %p2312_p12 }
  0x37   : > { %p2308_p9 = pneg %p2307_p7 }
  0x39   : > { %p2315_p1 = pnand %p2314_p2, %p2308_p9 }
  0x3b   : > { %2318 = shalt.err (!%p2315_p1)
}
  0x3c   : > { %s2425_s12 = smov 64   ;;  %s2426_s13 = smov 4  }
  0x3d   : > { %2135 = dma.hbm_to_vmem [thread:$0]  (!%p2519_p11), %s2982_s3, 1024, %s2523_s6, [#allocation12], %s2425_s12, %s2425_s12, %s2426_s13  }
  0x3e   : > { %s2578_s16 = sadd.s32 1, %s2419_s21   ;;  %s29_s23 = sadd.s32 1, %s2415_s20 }
  0x3f   : > { %s26_s17 = ssub.s32 %s2419_s21, %s2578_s16  ;;  %p36_p6 = scmp.ne.s32.totalorder %s2415_s20, %s2411_s19 }
  0x40   : > { %p27_p13 = scmp.eq.s32.totalorder %s26_s17, 0  ;;  %p37_p10 = scmp.eq.s32.totalorder %s2419_s21, 0 }
  0x41   : > { %p2992_p5 = scmp.eq.s32.totalorder %s2489_s22, 1  ;;  %p2146_p9 = scmp.lt.s32.totalorder %s2419_s21, 2 }
  0x42   : > { %s2587_s27 = scalar_select %p27_p13, %s2415_s20, %s29_s23  }
  0x43   : > { %p38_p3 = por %p37_p10, %p36_p6  ;;  %p2591_p7 = por %p2992_p5, %p36_p6 }
  0x44   : > { %s208_s29 = sand.u32 1, %s2415_s20   ;;  %s1936_s6 = sshll.u32 %s2419_s21, 7 }
  0x45   : > { %s2993_s30 = scalar_select %p2591_p7, 1, 0 }
  0x46   : > { %s1935_s7 = sshll.u32 %s208_s29, 3  ;;  %s2601_s10 = scalar_lea.hbm %s2979_s0, %s1936_s6 }
  0x47   : > { %s212_s11 = scalar_lea.vmem [#allocation8], %s1935_s7  ;;  %p2605_p11 = pnand %p2146_p9, %p38_p3 }
  0x48   : > { %s219_s28 = sshll.u32 %s212_s11, 4  ;;  %s209_s13 = scalar_lea.sflag [#allocation9], %s208_s29  ;;  %s2603_s28 = int_to_ptr.vmem [resolvable:$true] %s219_s28 }
  0x49   : > { %s2319_s14 = scalar_lea.hbm %s2601_s10, 128  ;;  %p2321_p0 = pneg %p2605_p11 }
  0x4a   : > { %p2320_p12 = scmp.ne.s32.totalorder %s2601_s10, %s2319_s14  ;;  %s2324_s23 = scalar_lea.hbm %s2979_s0, 256 }
  0x4b   : > { %p2325_p13 = scmp.lt.u32.totalorder %s2601_s10, %s2979_s0  ;;  %p2326_p6 = scmp.lt.u32.totalorder %s2324_s23, %s2319_s14 }
  0x4c   : > { %p2322_p2 = pnand %p2321_p0, %p2320_p12  ;;  %p2328_p3 = scmp.lt.u32.totalorder %s2319_s14, %s2601_s10 }
  0x4d   : > { %p2327_p10 = por %p2326_p6, %p2325_p13 }
  0x4e   : > { %p2323_p1 = pneg %p2322_p2 }
  0x4f   : > { %p2329_p5 = por %p2328_p3, %p2327_p10 }
  0x51   : > { %p2330_p9 = pnand %p2329_p5, %p2323_p1 }
  0x53   : > { %2333 = shalt.err (!%p2330_p9)
}
  0x54   : > { %s2334_s29 = scalar_lea.vmem %s2603_s28, 128  ;;  %s2427_s8 = smov [#allocation8]  }
  0x55   : > { %p2335_p12 = scmp.ne.s32.totalorder %s2603_s28, %s2334_s29  ;;  %s2339_s9 = sshll.u32 %s2427_s8, 4  ;;  %s2340_s9 = int_to_ptr.vmem [resolvable:$false] %s2339_s9 }
  0x56   : > { %s2341_s11 = scalar_lea.vmem %s2340_s9, 256  ;;  %p2342_p4 = scmp.lt.s32.totalorder %s2603_s28, %s2340_s9 }
  0x57   : > { %p2337_p2 = pnand %p2335_p12, %p2321_p0  ;;  %p2343_p13 = scmp.lt.s32.totalorder %s2341_s11, %s2334_s29 }
  0x59   : > { %p2338_p7 = pneg %p2337_p2  ;;  %p2344_p6 = por %p2343_p13, %p2342_p4 }
  0x5b   : > { %p2345_p10 = pnand %p2344_p6, %p2338_p7 }
  0x5d   : > { %2348 = shalt.err (!%p2345_p10)
}
  0x5e   : > { %2139 = dma.hbm_to_vmem [thread:$0]  (!%p2605_p11), %s2601_s10, 128, %s2603_s28, %s209_s13  }
  0x5f   : > { %228 = sbr.rel (%p2508_p8) target bundleno = 1696 (0x6a0), region = 40  ;;  %s2637_s14 = sand.u32 (!%p2508_p8), 1, %s2411_s19  }
  0x60   : > { %s1938_s15 = sshll.u32 (!%p2508_p8), %s2637_s14, 3  ;;  %s231_s17 = scalar_lea.sflag (!%p2508_p8), [#allocation9], %s2637_s14 }
  0x61   : > { %s2643_s23 = scalar_lea.vmem (!%p2508_p8), [#allocation8], %s1938_s15  ;;  %p2995_p4 = scmp.ne.s32.totalorder (!%p2508_p8), %s2988_s24, 0 }
  0x66   : > { %2394 = dma.done.wait (%p2995_p4), %s231_s17, 128  }
  0x67   : > { %2396 = vsyncadd (%p2995_p4), %s231_s17, 4294967168  ;;  %p2996_p7 = scmp.eq.s32.totalorder %s2489_s22, 0 }
  0x69   : > { %2398 = dma.done.wait (%p2996_p7), [#allocation12], 4096   ;;  %p2997_p8 = pmov %p2996_p7 }
  0x6a   : > { %v2428_v0 = vmov 0   ;;  %v2199_v1 = vld [vmem:[#allocation11 + $0x4] ss:$12 sps:$4 sm:$0xff]   ;;  %v2201_v2 = vld [vmem:[#allocation11] ss:$12 sps:$4 sm:$0xff]   ;;  %v2429_v20 = vmov 0.0   ;;  %v306_v21 = vlaneseq }
  0x6b   : > { %2400 = vsyncadd (%p2997_p8), [#allocation12], 4294963200  ;;  %481 = vmatprep.mubr.bf16.mxu0 %v2428_v0  ;;  %2197 = vset.pattern.permute.xlu1 %v2428_v0  ;;  %v2202_v3 = vld [vmem:[#allocation11 + $0x1c] ss:$12 sps:$4 sm:$0xff]   ;;  %v2204_v4 = vld [vmem:[#allocation11 + $0x18] ss:$12 sps:$4 sm:$0xff]  }
  0x6c   : > { %2198 = vset.pattern.permute.xlu0 %v2428_v0  ;;  %449 = vmatprep.subr.bf16.mxu0 %v2199_v1  ;;  %v2205_v5 = vld [vmem:[#allocation11 + $0x34] ss:$12 sps:$4 sm:$0xff]   ;;  %v2207_v6 = vld [vmem:[#allocation11 + $0x30] ss:$12 sps:$4 sm:$0xff]   ;;  %v2208_v7 = vld [vmem:[#allocation11 + $0x4c] ss:$12 sps:$4 sm:$0xff]  }
  0x6d   : > { %450 = vmatpush1.bf16.msra.mxu0 %v2201_v2  ;;  %v2210_v8 = vld [vmem:[#allocation11 + $0x48] ss:$12 sps:$4 sm:$0xff]   ;;  %v2211_v9 = vld [vmem:[#allocation11 + $0x64] ss:$12 sps:$4 sm:$0xff]   ;;  %v2213_v10 = vld [vmem:[#allocation11 + $0x60] ss:$12 sps:$4 sm:$0xff]   ;;  %2029 = vmatprep.subr.bf16.mxu1 %v2429_v20 }
  0x6e   : > { %451 = vmatprep.subr.bf16.mxu0 %v2202_v3  ;;  %v2214_v11 = vld [vmem:[#allocation11 + $0x7c] ss:$12 sps:$4 sm:$0xff]   ;;  %v2216_v12 = vld [vmem:[#allocation11 + $0x78] ss:$12 sps:$4 sm:$0xff]   ;;  %v2217_v13 = vld [vmem:[#allocation11 + $0x94] ss:$12 sps:$4 sm:$0xff]  }
  0x6f   : > { %v2219_v14 = vld [vmem:[#allocation11 + $0x90] ss:$12 sps:$4 sm:$0xff]   ;;  %v2220_v15 = vld [vmem:[#allocation11 + $0xac] ss:$12 sps:$4 sm:$0xff]   ;;  %v2222_v16 = vld [vmem:[#allocation11 + $0xa8] ss:$12 sps:$4 sm:$0xff]  }
  0x70   : > { %v270_v17 = vld [vmem:[%s2643_s23] sm:$0xff]  ;;  %v2224_v22 = vld [vmem:[#allocation11 + $0x20] ss:$12 sps:$4 sm:$0xff]   ;;  %v2657_v23 = vshrl.u32 %v306_v21, 7  ;;  %s2430_s10 = smov 32   ;;  %s2431_s28 = smov 96  }
  0x71   : > { %452 = vmatpush1.bf16.msra.mxu0 %v2204_v4  ;;  %v271_v18 = vpack.c.bf16 %v270_v17, %v270_v17  ;;  %v2223_v19 = vld [vmem:[#allocation11 + $0x8] ss:$12 sps:$4 sm:$0xff]   ;;  %v2225_v24 = vld [vmem:[#allocation11 + $0x38] ss:$12 sps:$4 sm:$0xff]   ;;  %v2664_v26 = vld [vmem:[%s2981_s2] sm:$0x7] }
  0x72   : > { %453 = vmatprep.subr.bf16.mxu0 %v2205_v5  ;;  %2030 = vmatpush3.bf16.msra.mxu1 %v2223_v19  ;;  %v312_v25 = vsub.s32 1, %v2657_v23  ;;  %v308_v27 = vsub.s32 0, %v2657_v23  ;;  %v2226_v29 = vld [vmem:[#allocation11 + $0x50] ss:$12 sps:$4 sm:$0xff]   ;;  %v2227_v35 = vld [vmem:[#allocation11 + $0x68] ss:$12 sps:$4 sm:$0xff]  }
  0x73   : > { %2031 = vmatprep.subr.bf16.mxu1 %v2429_v20  ;;  %v2228_v38 = vld [vmem:[#allocation11 + $0x80] ss:$12 sps:$4 sm:$0xff]   ;;  %s2432_s12 = smov 64   ;;  %v2229_v39 = vld [vmem:[#allocation11 + $0x98] ss:$12 sps:$4 sm:$0xff]   ;;  %vm2433_vm0 = vmmov 0  }
  0x74   : > { %v313_v28 = vrot.slane %v2664_v26, %v312_v25  ;;  %v309_v32 = vrot.slane %v2664_v26, %v308_v27  ;;  %v2230_v40 = vld [vmem:[#allocation11 + $0xb0] ss:$12 sps:$4 sm:$0xff]   ;;  %2045 = vmatprep.mubr.msk.bf16.mxu1 %vm2433_vm0, %v2429_v20  ;;  %vm1006_vm1 = vcmask 261120   ;;  %v2434_v41 = vmov 1983009808   ;;  %s1992_s6 = sshll.u32 %s2489_s22, 7 }
  0x75   : > { %454 = vmatpush1.bf16.msra.mxu0 %v2207_v6  ;;  %1007 = vst.msk [vmem:[#allocation7] sm:$0xff] %vm1006_vm1, %v2429_v20  ;;  %1008 = vst.msk [vmem:[#allocation7 + $0x8] sm:$0xff] %vm1006_vm1, %v2429_v20  ;;  %v543_v42 = vunpack.c.l.s4 %v2434_v41  ;;  %v2435_v43 = vmov 1934713408   ;;  %vm680_vm2 = vcmask 257024   ;;  %vm997_vm3 = vcmask 7168   ;;  %s2935_s17 = scalar_lea.hbm %s2984_s5, %s1992_s6 }
  0x76   : > { %455 = vmatprep.subr.bf16.mxu0 %v2208_v7  ;;  %2032 = vmatpush3.bf16.msra.mxu1 %v2224_v22  ;;  %1009 = vst.msk [vmem:[#allocation7 + $0x10] sm:$0xff] %vm1006_vm1, %v2429_v20  ;;  %1010 = vst.msk [vmem:[#allocation7 + $0x18] sm:$0xff] %vm1006_vm1, %v2429_v20  ;;  %v575_v44 = vunpack.c.l.s4 %v2435_v43  ;;  %vm1207_vm4 = vcmask 64512   ;;  %vm1331_vm5 = vcmask 1043456   ;;  %vm1710_vm6 = vcmask 523264   ;;  %s268_s29 = scalar_lea.vmem [#allocation14], %s1938_s15 }
  0x77   : > { %2033 = vmatprep.subr.bf16.mxu1 %v2429_v20  ;;  %v544_v45 = vunpack.c.0.s8 %v543_v42  ;;  %1002 = vst.msk [vmem:[#allocation6] sm:$0xff] %vm997_vm3, %v2429_v20  ;;  %1003 = vst.msk [vmem:[#allocation6 + $0x8] sm:$0xff] %vm997_vm3, %v2429_v20  ;;  %vm1712_vm7 = vcmask 785408   ;;  %s1841_s8 = sshll.u32 %s268_s29, 4  ;;  %s1828_s22 = scalar_lea.sflag [#allocation10], %s2637_s14  ;;  %s2937_s8 = int_to_ptr.vmem [resolvable:$true] %s1841_s8 }
  0x78   : > { %v576_v48 = vunpack.c.0.s8 %v575_v44  ;;  %1004 = vst.msk [vmem:[#allocation6 + $0x10] sm:$0xff] %vm997_vm3, %v2429_v20  ;;  %1005 = vst.msk [vmem:[#allocation6 + $0x18] sm:$0xff] %vm997_vm3, %v2429_v20  ;;  %s2349_s23 = scalar_lea.vmem %s2937_s8, 128  ;;  %p2998_p0 = scmp.ne.s32.totalorder %s2993_s30, 0 }
  0x79   : > { %456 = vmatpush1.bf16.msra.mxu0 %v2210_v8  ;;  %v2696_v49 = vsub.s32 %v544_v45, %v2657_v23  ;;  %p2350_p11 = scmp.ne.s32.totalorder %s2937_s8, %s2349_s23  ;;  %s2437_s15 = smov [#allocation14]  }
  0x7a   : > { %457 = vmatprep.subr.bf16.mxu0 %v2211_v9  ;;  %2034 = vmatpush3.bf16.msra.mxu1 %v2225_v24  ;;  %v2699_v56 = vsub.s32 %v576_v48, %v2657_v23  ;;  %s2353_s24 = sshll.u32 %s2437_s15, 4  ;;  %s2354_s24 = int_to_ptr.vmem [resolvable:$false] %s2353_s24 }
  0x7b   : > { %2035 = vmatprep.subr.bf16.mxu1 %v2429_v20  ;;  %p2351_p1 = pnand %p2350_p11, %p2998_p0  ;;  %s2355_s26 = scalar_lea.vmem %s2354_s24, 256 }
  0x7c   : > { %p2356_p5 = scmp.lt.s32.totalorder %s2937_s8, %s2354_s24  ;;  %p2357_p9 = scmp.lt.s32.totalorder %s2355_s26, %s2349_s23 }
  0x7d   : > { %458 = vmatpush1.bf16.msra.mxu0 %v2213_v10  ;;  %p2352_p3 = pneg %p2351_p1 }
  0x7e   : > { %459 = vmatprep.subr.bf16.mxu0 %v2214_v11  ;;  %2036 = vmatpush3.bf16.msra.mxu1 %v2226_v29  ;;  %p2358_p12 = por %p2357_p9, %p2356_p5 }
  0x7f   : > { %2037 = vmatprep.subr.bf16.mxu1 %v2429_v20 }
  0x80   : > { %p2359_p2 = pnand %p2358_p12, %p2352_p3 }
  0x81   : > { %460 = vmatpush1.bf16.msra.mxu0 %v2216_v12 }
  0x82   : > { %461 = vmatprep.subr.bf16.mxu0 %v2217_v13  ;;  %2038 = vmatpush3.bf16.msra.mxu1 %v2227_v35 }
  0x83   : > { %2039 = vmatprep.subr.bf16.mxu1 %v2429_v20 }
  0x85   : > { %462 = vmatpush1.bf16.msra.mxu0 %v2219_v14 }
  0x86   : > { %463 = vmatprep.subr.bf16.mxu0 %v2220_v15  ;;  %2040 = vmatpush3.bf16.msra.mxu1 %v2228_v38 }
  0x87   : > { %2041 = vmatprep.subr.bf16.mxu1 %v2429_v20 }
  0x89   : > { %464 = vmatpush1.bf16.msra.mxu0 %v2222_v16 }
  0x8a   : > { %2073 = vmatprep.subr.bf16.mxu0 %v2429_v20  ;;  %2042 = vmatpush3.bf16.msra.mxu1 %v2229_v39 }
  0x8b   : > { %2043 = vmatprep.subr.bf16.mxu1 %v2429_v20 }
  0x8c   : > { %482 = vmatmul.mubr.bf16.vlgmr.msra.gmra.mrb[0].mxu0 %v271_v18 }
  0x8d   : > { %2075 = vmatprep.mubr.msk.bf16.mxu0 %vm2433_vm0, %v2429_v20 }
  0x8e   : > { %2044 = vmatpush3.bf16.msra.mxu1 %v2230_v40 }
  0x8f   : > { %2049 = vmatprep.subr.bf16.mxu1 %v2429_v20 }
  0x91   : > { %2046 = vmatmul.mubr.bf16.vlgmr.msra.gmra.mrb[0].mxu1 %v271_v18 }
  0x92   : > { %2051 = vmatprep.mubr.msk.bf16.mxu1 %vm2433_vm0, %v2429_v20 }
 0x15f   : > { %v483_v30 = vpop.f32.mrb[0].mxu0 }
 0x160   : > { %v485_v31 = vpop.f32.mrb[1].mxu0  ;;  %v484_v37 = vadd.f32 %v483_v30, %v309_v32 }
 0x161   : > { %v486_v33 = vadd.f32 %v485_v31, %v313_v28  ;;  %v487_v34 = vpop.f32.mrb[2].mxu0 }
 0x162   : > { %v488_v36 = vpop.f32.mrb[3].mxu0 }
 0x163   : > { %692 = vrot.lane.b32.xlu1 %v486_v33, %s2430_s10  ;;  %686 = vrot.lane.b32.xlu0 %v486_v33, %s2431_s28 }
 0x167   : > { %689 = vrot.lane.b32.xlu0 %v486_v33, %s2432_s12  ;;  %531 = vrot.lane.b32.xlu1 %v484_v37, %s2431_s28 }
 0x16b   : > { %534 = vrot.lane.b32.xlu0 %v484_v37, %s2432_s12  ;;  %537 = vrot.lane.b32.xlu1 %v484_v37, %s2430_s10 }
 0x1d5   : > { %v693_v46 = vpop.permute.xlu1 %692  ;;  %v687_v47 = vpop.permute.xlu0 %686 }
 0x1d6   : > { %v711_v50 = vcombine.low %v687_v47, %v693_v46  ;;  %v712_v51 = vcombine.high %v687_v47, %v693_v46 }
 0x1d8   : > { %v719_v57 = vrot.slane %v711_v50, %v2696_v49  ;;  %v726_v58 = vrot.slane %v712_v51, %v2696_v49 }
 0x1d9   : > { %v690_v52 = vpop.permute.xlu0 %689  ;;  %v532_v53 = vpop.permute.xlu1 %531 }
 0x1da   : > { %v695_v54 = vcombine.low %v486_v33, %v690_v52  ;;  %v696_v55 = vcombine.high %v486_v33, %v690_v52 }
 0x1dc   : > { %v703_v59 = vrot.slane %v695_v54, %v2696_v49  ;;  %v710_v60 = vrot.slane %v696_v55, %v2696_v49 }
 0x1dd   : > { %v535_v61 = vpop.permute.xlu0 %534  ;;  %v538_v62 = vpop.permute.xlu1 %537 }
 0x1de   : > { %v727_v63 = vcombine.low %v703_v59, %v719_v57  ;;  %v728_v0 = vcombine.high %v703_v59, %v719_v57  ;;  %v743_v1 = vcombine.low %v710_v60, %v726_v58  ;;  %v744_v2 = vcombine.high %v710_v60, %v726_v58 }
 0x1df   : > { %v540_v3 = vcombine.low %v484_v37, %v535_v61  ;;  %v541_v4 = vcombine.high %v484_v37, %v535_v61  ;;  %v556_v5 = vcombine.low %v532_v53, %v538_v62  ;;  %v557_v6 = vcombine.high %v532_v53, %v538_v62 }
 0x1e0   : > { %v735_v7 = vrot.slane %v727_v63, %v2699_v56  ;;  %v742_v8 = vrot.slane %v728_v0, %v2699_v56  ;;  %v751_v9 = vrot.slane %v743_v1, %v2699_v56  ;;  %v758_v10 = vrot.slane %v744_v2, %v2699_v56 }
 0x1e1   : > { %v548_v11 = vrot.slane %v540_v3, %v2696_v49  ;;  %v555_v12 = vrot.slane %v541_v4, %v2696_v49  ;;  %v564_v13 = vrot.slane %v556_v5, %v2696_v49  ;;  %v571_v14 = vrot.slane %v557_v6, %v2696_v49 }
 0x1e2   : > { %v763_v15 = vcombine.low %v735_v7, %v742_v8  ;;  %v1968_v16 = vcombine.high %v735_v7, %v742_v8  ;;  %v779_v17 = vcombine.low %v751_v9, %v758_v10  ;;  %v1969_v18 = vcombine.high %v751_v9, %v758_v10 }
 0x1e3   : > { %v572_v19 = vcombine.low %v548_v11, %v564_v13  ;;  %v573_v21 = vcombine.high %v548_v11, %v564_v13  ;;  %v588_v22 = vcombine.low %v555_v12, %v571_v14  ;;  %v589_v24 = vcombine.high %v555_v12, %v571_v14 }
 0x1e4   : > { %v770_v25 = vrot.slane %v763_v15, %v2696_v49  ;;  %v778_v27 = vrot.slane %v1968_v16, %v2696_v49  ;;  %v786_v28 = vrot.slane %v779_v17, %v2696_v49  ;;  %v794_v29 = vrot.slane %v1969_v18, %v2696_v49 }
 0x1e5   : > { %v580_v30 = vrot.slane %v572_v19, %v2699_v56  ;;  %v587_v31 = vrot.slane %v573_v21, %v2699_v56  ;;  %v596_v32 = vrot.slane %v588_v22, %v2699_v56  ;;  %v603_v33 = vrot.slane %v589_v24, %v2699_v56 }
 0x1e6   : > { %v795_v34 = vcombine.low %v770_v25, %v778_v27  ;;  %v796_v35 = vcombine.high %v770_v25, %v778_v27  ;;  %v811_v36 = vcombine.low %v786_v28, %v794_v29  ;;  %v812_v37 = vcombine.high %v786_v28, %v794_v29  ;;  %v524_v27 = vpop.f32.mrb[0].mxu1 }
 0x1e7   : > { %v608_v38 = vcombine.low %v580_v30, %v587_v31  ;;  %v1966_v39 = vcombine.high %v580_v30, %v587_v31  ;;  %v624_v40 = vcombine.low %v596_v32, %v603_v33  ;;  %v1967_v41 = vcombine.high %v596_v32, %v603_v33  ;;  %v2047_v28 = vpop.f32.mrb[1].mxu1 }
 0x1e8   : > { %v803_v42 = vrot.slane %v795_v34, %v2699_v56  ;;  %v810_v43 = vrot.slane %v796_v35, %v2699_v56  ;;  %v819_v44 = vrot.slane %v811_v36, %v2699_v56  ;;  %v826_v45 = vrot.slane %v812_v37, %v2699_v56  ;;  %v527_v29 = vpop.f32.mrb[2].mxu1 }
 0x1e9   : > { %v615_v46 = vrot.slane %v608_v38, %v2696_v49  ;;  %v623_v47 = vrot.slane %v1966_v39, %v2696_v49  ;;  %v631_v48 = vrot.slane %v624_v40, %v2696_v49  ;;  %v639_v50 = vrot.slane %v1967_v41, %v2696_v49  ;;  %v2048_v30 = vpop.f32.mrb[3].mxu1 }
 0x1ea   : > { %v827_v51 = vcombine.low %v803_v42, %v819_v44  ;;  %v828_v52 = vcombine.high %v803_v42, %v819_v44  ;;  %v829_v53 = vcombine.low %v810_v43, %v826_v45  ;;  %v830_v54 = vcombine.high %v810_v43, %v826_v45 }
 0x1eb   : > { %v640_v55 = vcombine.low %v615_v46, %v623_v47  ;;  %v641_v57 = vcombine.high %v615_v46, %v623_v47  ;;  %v656_v58 = vcombine.low %v631_v48, %v639_v50  ;;  %v657_v59 = vcombine.high %v631_v48, %v639_v50 }
 0x1ec   : > { %v831_v60 = vpack.c.bf16 %v827_v51, %v827_v51  ;;  %v832_v61 = vpack.c.bf16 %v828_v52, %v828_v52  ;;  %v833_v62 = vpack.c.bf16 %v829_v53, %v829_v53  ;;  %v834_v63 = vpack.c.bf16 %v830_v54, %v830_v54 }
 0x1ed   : > { %v648_v0 = vrot.slane %v640_v55, %v2699_v56  ;;  %v655_v1 = vrot.slane %v641_v57, %v2699_v56  ;;  %v664_v2 = vrot.slane %v656_v58, %v2699_v56  ;;  %v671_v3 = vrot.slane %v657_v59, %v2699_v56 }
 0x1ee   : > { %835 = vst.msk [vmem:[#allocation3] sm:$0xf] %vm680_vm2, %v831_v60  ;;  %836 = vst.msk [vmem:[#allocation3 + $0x4] sm:$0xf] %vm680_vm2, %v832_v61  ;;  %v2436_v31 = vmov -1e+30  }
 0x1ef   : > { %837 = vst.msk [vmem:[#allocation3 + $0x8] sm:$0xf] %vm680_vm2, %v833_v62  ;;  %838 = vst.msk [vmem:[#allocation3 + $0xc] sm:$0xf] %vm680_vm2, %v834_v63  ;;  %v672_v4 = vcombine.low %v648_v0, %v664_v2  ;;  %v673_v5 = vcombine.high %v648_v0, %v664_v2  ;;  %v674_v6 = vcombine.low %v655_v1, %v671_v3  ;;  %v316_v43 = vsub.s32 2, %v2657_v23 }
 0x1f0   : > { %v675_v7 = vcombine.high %v655_v1, %v671_v3  ;;  %998 = vst.msk [vmem:[#allocation5] sm:$0xff] %vm997_vm3, %v2436_v31  ;;  %999 = vst.msk [vmem:[#allocation5 + $0x8] sm:$0xff] %vm997_vm3, %v2436_v31 }
 0x1f1   : > { %v676_v8 = vpack.c.bf16 %v672_v4, %v672_v4  ;;  %v677_v9 = vpack.c.bf16 %v673_v5, %v673_v5  ;;  %v678_v10 = vpack.c.bf16 %v674_v6, %v674_v6  ;;  %1000 = vst.msk [vmem:[#allocation5 + $0x10] sm:$0xff] %vm997_vm3, %v2436_v31  ;;  %1001 = vst.msk [vmem:[#allocation5 + $0x18] sm:$0xff] %vm997_vm3, %v2436_v31 }
 0x1f2   : > { %v679_v11 = vpack.c.bf16 %v675_v7, %v675_v7  ;;  %v317_v48 = vrot.slane %v2664_v26, %v316_v43 }
 0x1f3   : > { %681 = vst.msk [vmem:[#allocation2] sm:$0xf] %vm680_vm2, %v676_v8  ;;  %682 = vst.msk [vmem:[#allocation2 + $0x4] sm:$0xf] %vm680_vm2, %v677_v9 }
 0x1f4   : > { %683 = vst.msk [vmem:[#allocation2 + $0x8] sm:$0xf] %vm680_vm2, %v678_v10  ;;  %684 = vst.msk [vmem:[#allocation2 + $0xc] sm:$0xf] %vm680_vm2, %v679_v11  ;;  %v525_v51 = vadd.f32 %v524_v27, %v317_v48 }
 0x1f5   : > { %v1011_v12 = vld [vmem:[#allocation3] sm:$0xf]  ;;  %v1012_v14 = vld [vmem:[#allocation3 + $0x4] sm:$0xf] }
 0x1f6   : > { %v1023_v13 = vsel %vm1006_vm1, %v1011_v12, 0  ;;  %v1069_v16 = vsel %vm1006_vm1, %v1012_v14, 0  ;;  %v1013_v17 = vld [vmem:[#allocation3 + $0x8] sm:$0xf]  ;;  %v1014_v21 = vld [vmem:[#allocation3 + $0xc] sm:$0xf] }
 0x1f7   : > { %2050 = vmatpush3.bf16.xpose.msra.mxu1 %v1023_v13  ;;  %v1115_v19 = vsel %vm1006_vm1, %v1013_v17, 0  ;;  %v1161_v24 = vsel %vm1006_vm1, %v1014_v21, 0  ;;  %v2794_v55 = vld [vmem:[#allocation5] sm:$0xff]  ;;  %v2804_v59 = vld [vmem:[#allocation5 + $0x8] sm:$0xff] }
 0x1f8   : > { %2055 = vmatprep.subr.bf16.mxu1 %v2429_v20  ;;  %v2814_v63 = vld [vmem:[#allocation5 + $0x10] sm:$0xff]  ;;  %v2824_v4 = vld [vmem:[#allocation5 + $0x18] sm:$0xff] }
 0x1fa   : > { %v993_v15 = vld [vmem:[#allocation2] sm:$0xf]  ;;  %v994_v18 = vld [vmem:[#allocation2 + $0x4] sm:$0xf] }
 0x1fb   : > { %v995_v22 = vld [vmem:[#allocation2 + $0x8] sm:$0xf]  ;;  %v996_v25 = vld [vmem:[#allocation2 + $0xc] sm:$0xf] }
 0x1fe   : > { %2052 = vmatmul.mubr.msk.bf16.vlgmr.msra.gmra.mrb[4].mxu1 %vm1006_vm1, %v993_v15 }
 0x1ff   : > { %2056 = vmatpush3.bf16.xpose.msra.mxu1 %v1069_v16  ;;  %2057 = vmatprep.mubr.msk.bf16.mxu1 %vm2433_vm0, %v2429_v20 }
 0x200   : > { %2061 = vmatprep.subr.bf16.mxu1 %v2429_v20 }
 0x206   : > { %2058 = vmatmul.mubr.msk.bf16.vlgmr.msra.gmra.mrb[8].mxu1 %vm1006_vm1, %v994_v18 }
 0x207   : > { %2062 = vmatpush3.bf16.xpose.msra.mxu1 %v1115_v19  ;;  %2063 = vmatprep.mubr.msk.bf16.mxu1 %vm2433_vm0, %v2429_v20 }
 0x208   : > { %2067 = vmatprep.subr.bf16.mxu1 %v2429_v20 }
 0x20e   : > { %2064 = vmatmul.mubr.msk.bf16.vlgmr.msra.gmra.mrb[12].mxu1 %vm1006_vm1, %v995_v22 }
 0x20f   : > { %2068 = vmatpush3.bf16.xpose.msra.mxu1 %v1161_v24  ;;  %2069 = vmatprep.mubr.msk.bf16.mxu1 %vm2433_vm0, %v2429_v20 }
 0x210   : > { %2079 = vmatprep.subr.bf16.mxu1 %v2429_v20 }
 0x216   : > { %2070 = vmatmul.mubr.msk.bf16.vlgmr.msra.gmra.mrb[16].mxu1 %vm1006_vm1, %v996_v25 }
 0x217   : > { %2081 = vmatprep.mubr.msk.bf16.mxu1 %vm2433_vm0, %v2429_v20 }
 0x2d1   : > { %v2773_v32 = vpop.f32.mrb[4].mxu1 }
 0x2d2   : > { %v2053_v33 = vpop.f32.mrb[5].mxu1  ;;  %v1208_v34 = vsel %vm1207_vm4, %v2773_v32, -inf }
 0x2d3   : > { %1209 = vmax.xlane.f32.xlu0 %v1208_v34  ;;  %v1062_v35 = vpop.f32.mrb[6].mxu1 }
 0x2d4   : > { %v2054_v36 = vpop.f32.mrb[7].mxu1 }
 0x2d9   : > { %v2777_v37 = vpop.f32.mrb[8].mxu1 }
 0x2da   : > { %v2059_v38 = vpop.f32.mrb[9].mxu1  ;;  %v1211_v39 = vsel %vm1207_vm4, %v2777_v37, -inf }
 0x2db   : > { %1212 = vmax.xlane.f32.xlu1 %v1211_v39  ;;  %v1108_v40 = vpop.f32.mrb[10].mxu1 }
 0x2dc   : > { %v2060_v41 = vpop.f32.mrb[11].mxu1 }
 0x2e1   : > { %v2781_v42 = vpop.f32.mrb[12].mxu1 }
 0x2e2   : > { %v2065_v44 = vpop.f32.mrb[13].mxu1  ;;  %v1214_v45 = vsel %vm1207_vm4, %v2781_v42, -inf }
 0x2e3   : > { %1215 = vmax.xlane.f32.xlu0 %v1214_v45  ;;  %v1154_v46 = vpop.f32.mrb[14].mxu1 }
 0x2e4   : > { %v2066_v47 = vpop.f32.mrb[15].mxu1 }
 0x2e9   : > { %v2787_v50 = vpop.f32.mrb[16].mxu1 }
 0x2ea   : > { %v2071_v52 = vpop.f32.mrb[17].mxu1  ;;  %v1217_v53 = vsel %vm1207_vm4, %v2787_v50, -inf }
 0x2eb   : > { %1218 = vmax.xlane.f32.xlu0 %v1217_v53  ;;  %v1200_v54 = vpop.f32.mrb[18].mxu1 }
 0x2ec   : > { %840 = vrot.lane.b32.xlu1 %v525_v51, %s2431_s28  ;;  %v2072_v23 = vpop.f32.mrb[19].mxu1 }
 0x2f0   : > { %846 = vrot.lane.b32.xlu1 %v525_v51, %s2430_s10 }
 0x301   : > { %843 = vrot.lane.b32.xlu0 %v525_v51, %s2432_s12 }
 0x360   : > { %v1210_v57 = vpop.xlane.xlu0 %1209 }
 0x361   : > { %v2797_v26 = vmax.f32 %v2794_v55, %v1210_v57 }
 0x363   : > { %v1224_v58 = vsub.f32 %v2794_v55, %v2797_v26  ;;  %1521 = vst.msk [vmem:[#allocation5] sm:$0xff] %vm997_vm3, %v2797_v26  ;;  %1238 = vperm.xlu1 %2197, %v2797_v26  }
 0x368   : > { %v1213_v60 = vpop.xlane.xlu1 %1212 }
 0x369   : > { %v2807_v61 = vmax.f32 %v2804_v59, %v1213_v60 }
 0x36b   : > { %v1225_v62 = vsub.f32 %v2804_v59, %v2807_v61  ;;  %1522 = vst.msk [vmem:[#allocation5 + $0x8] sm:$0xff] %vm997_vm3, %v2807_v61  ;;  %1243 = vperm.xlu0 %2198, %v2807_v61   ;;  %v1270_v59 = vld [vmem:[#allocation6 + $0x10] sm:$0xff] }
 0x36c   : > { %v841_v2 = vpop.permute.xlu1 %840 }
 0x370   : > { %v1216_v0 = vpop.xlane.xlu0 %1215  ;;  %v847_v5 = vpop.permute.xlu1 %846 }
 0x371   : > { %v2817_v1 = vmax.f32 %v2814_v63, %v1216_v0  ;;  %v865_v8 = vcombine.low %v841_v2, %v847_v5  ;;  %v866_v9 = vcombine.high %v841_v2, %v847_v5 }
 0x373   : > { %v1226_v3 = vsub.f32 %v2814_v63, %v2817_v1  ;;  %1523 = vst.msk [vmem:[#allocation5 + $0x10] sm:$0xff] %vm997_vm3, %v2817_v1  ;;  %1248 = vperm.xlu1 %2197, %v2817_v1   ;;  %v873_v14 = vrot.slane %v865_v8, %v2696_v49  ;;  %v880_v15 = vrot.slane %v866_v9, %v2696_v49 }
 0x378   : > { %v1219_v6 = vpop.xlane.xlu0 %1218 }
 0x379   : > { %v2827_v7 = vmax.f32 %v2824_v4, %v1219_v6 }
 0x37b   : > { %v1227_v10 = vsub.f32 %v2824_v4, %v2827_v7  ;;  %1524 = vst.msk [vmem:[#allocation5 + $0x18] sm:$0xff] %vm997_vm3, %v2827_v7  ;;  %1253 = vperm.xlu1 %2197, %v2827_v7   ;;  %v1230_v4 = vmul.f32 1.442695, %v1225_v62 }
 0x37c   : > { %v844_v11 = vpop.permute.xlu0 %843 }
 0x37d   : > { %v849_v12 = vcombine.low %v525_v51, %v844_v11  ;;  %v850_v13 = vcombine.high %v525_v51, %v844_v11  ;;  %v1234_v55 = vmul.f32 1.442695, %v1227_v10 }
 0x37f   : > { %v857_v16 = vrot.slane %v849_v12, %v2696_v49  ;;  %v864_v17 = vrot.slane %v850_v13, %v2696_v49 }
 0x381   : > { %v881_v18 = vcombine.low %v857_v16, %v873_v14  ;;  %v882_v19 = vcombine.high %v857_v16, %v873_v14  ;;  %v897_v21 = vcombine.low %v864_v17, %v880_v15  ;;  %v898_v22 = vcombine.high %v864_v17, %v880_v15 }
 0x383   : > { %v889_v24 = vrot.slane %v881_v18, %v2699_v56  ;;  %v896_v25 = vrot.slane %v882_v19, %v2699_v56  ;;  %v905_v27 = vrot.slane %v897_v21, %v2699_v56  ;;  %v912_v28 = vrot.slane %v898_v22, %v2699_v56 }
 0x385   : > { %v917_v29 = vcombine.low %v889_v24, %v896_v25  ;;  %v1970_v30 = vcombine.high %v889_v24, %v896_v25  ;;  %v933_v31 = vcombine.low %v905_v27, %v912_v28  ;;  %v1971_v33 = vcombine.high %v905_v27, %v912_v28 }
 0x387   : > { %v924_v34 = vrot.slane %v917_v29, %v2696_v49  ;;  %v932_v35 = vrot.slane %v1970_v30, %v2696_v49  ;;  %v940_v36 = vrot.slane %v933_v31, %v2696_v49  ;;  %v948_v38 = vrot.slane %v1971_v33, %v2696_v49 }
 0x388   : > { %v1228_v30 = vmul.f32 1.442695, %v1224_v58 }
 0x389   : > { %v949_v39 = vcombine.low %v924_v34, %v932_v35  ;;  %v950_v40 = vcombine.high %v924_v34, %v932_v35  ;;  %v965_v41 = vcombine.low %v940_v36, %v948_v38  ;;  %v966_v43 = vcombine.high %v940_v36, %v948_v38  ;;  %v1268_v36 = vld [vmem:[#allocation6] sm:$0xff] }
 0x38b   : > { %v957_v44 = vrot.slane %v949_v39, %v2699_v56  ;;  %v964_v45 = vrot.slane %v950_v40, %v2699_v56  ;;  %v973_v46 = vrot.slane %v965_v41, %v2699_v56  ;;  %v980_v47 = vrot.slane %v966_v43, %v2699_v56  ;;  %v1269_v41 = vld [vmem:[#allocation6 + $0x8] sm:$0xff] }
 0x38d   : > { %v981_v48 = vcombine.low %v957_v44, %v973_v46  ;;  %v982_v51 = vcombine.high %v957_v44, %v973_v46  ;;  %v983_v52 = vcombine.low %v964_v45, %v980_v47  ;;  %v984_v53 = vcombine.high %v964_v45, %v980_v47 }
 0x38f   : > { %v985_v54 = vpack.c.bf16 %v981_v48, %v981_v48  ;;  %v986_v23 = vpack.c.bf16 %v982_v51, %v982_v51  ;;  %v987_v57 = vpack.c.bf16 %v983_v52, %v983_v52  ;;  %v988_v60 = vpack.c.bf16 %v984_v53, %v984_v53  ;;  %v1271_v51 = vld [vmem:[#allocation6 + $0x18] sm:$0xff] }
 0x391   : > { %989 = vst.msk [vmem:[#allocation4] sm:$0xf] %vm680_vm2, %v985_v54  ;;  %990 = vst.msk [vmem:[#allocation4 + $0x4] sm:$0xf] %vm680_vm2, %v986_v23 }
 0x392   : > { %991 = vst.msk [vmem:[#allocation4 + $0x8] sm:$0xf] %vm680_vm2, %v987_v57  ;;  %992 = vst.msk [vmem:[#allocation4 + $0xc] sm:$0xf] %vm680_vm2, %v988_v60 }
 0x398   : > { %v1015_v0 = vld [vmem:[#allocation4] sm:$0xf]  ;;  %v1016_v2 = vld [vmem:[#allocation4 + $0x4] sm:$0xf] }
 0x399   : > { %v1333_v5 = vsel %vm1331_vm5, %v1015_v0, 0  ;;  %v1379_v6 = vsel %vm1331_vm5, %v1016_v2, 0  ;;  %v1017_v16 = vld [vmem:[#allocation4 + $0x8] sm:$0xf]  ;;  %v1018_v24 = vld [vmem:[#allocation4 + $0xc] sm:$0xf] }
 0x39a   : > { %2074 = vmatpush3.bf16.msra.mxu0 %v1333_v5  ;;  %2080 = vmatpush3.bf16.msra.mxu1 %v1379_v6  ;;  %v1471_v29 = vsel %vm1331_vm5, %v1018_v24, 0  ;;  %v1296_v6 = vld [vmem:[#allocation7] sm:$0xff] }
 0x39b   : > { %2085 = vmatprep.subr.bf16.mxu0 %v2429_v20  ;;  %2091 = vmatprep.subr.bf16.mxu1 %v2429_v20 }
 0x3e2   : > { %v1239_v8 = vpop.permute.xlu1 %1238 }
 0x3e3   : > { %v1256_v9 = vsub.f32 %v2773_v32, %v1239_v8  ;;  %v1425_v32 = vsel %vm1331_vm5, %v1017_v16, 0 }
 0x3e5   : > { %v1260_v11 = vmul.f32 1.442695, %v1256_v9 }
 0x3e7   : > { %2239 = vpow2.f32 %v1260_v11  ;;  %v2231_v11 = vld [vmem:[#allocation13] sm:$0xff]  }
 0x3ea   : > { %v1244_v12 = vpop.permute.xlu0 %1243 }
 0x3eb   : > { %v1257_v13 = vsub.f32 %v2777_v37, %v1244_v12 }
 0x3ed   : > { %v1262_v14 = vmul.f32 1.442695, %v1257_v13 }
 0x3ef   : > { %2241 = vpow2.f32 %v1262_v14 }
 0x3f1   : > { %v2240_v15 = vpop.eup %2239 }
 0x3f2   : > { %v1249_v17 = vpop.permute.xlu1 %1248  ;;  %v1276_v18 = vsel %vm1207_vm4, %v2240_v15, 0.0  ;;  %v1324_v19 = vpack.c.bf16 %v2240_v15, %v2240_v15  ;;  %v2232_v15 = vld [vmem:[#allocation13 + $0x8] sm:$0xff]  }
 0x3f3   : > { %v1258_v21 = vsub.f32 %v2781_v42, %v1249_v17  ;;  %1277 = vadd.xlane.f32.xlu0 %v1276_v18  ;;  %v1297_v18 = vld [vmem:[#allocation7 + $0x8] sm:$0xff] }
 0x3f4   : > { %2076 = vmatmul.mubr.msk.bf16.vlgmr.msra.gmra.mrb[4].mxu0 %vm1207_vm4, %v1324_v19 }
 0x3f5   : > { %v1264_v22 = vmul.f32 1.442695, %v1258_v21  ;;  %2086 = vmatpush3.bf16.msra.mxu0 %v1425_v32  ;;  %2087 = vmatprep.mubr.msk.bf16.mxu0 %vm2433_vm0, %v2429_v20  ;;  %v2233_v21 = vld [vmem:[#allocation13 + $0x10] sm:$0xff]  }
 0x3f6   : > { %2097 = vmatprep.subr.bf16.mxu0 %v2429_v20 }
 0x3f7   : > { %2243 = vpow2.f32 %v1264_v22 }
 0x3f9   : > { %v2242_v37 = vpop.eup %2241 }
 0x3fa   : > { %v1254_v25 = vpop.permute.xlu1 %1253  ;;  %v1279_v27 = vsel %vm1207_vm4, %v2242_v37, 0.0  ;;  %v1325_v28 = vpack.c.bf16 %v2242_v37, %v2242_v37 }
 0x3fb   : > { %v1259_v42 = vsub.f32 %v2787_v50, %v1254_v25  ;;  %1280 = vadd.xlane.f32.xlu1 %v1279_v27  ;;  %v1232_v50 = vmul.f32 1.442695, %v1226_v3  ;;  %v2234_v25 = vld [vmem:[#allocation13 + $0x18] sm:$0xff]  }
 0x3fc   : > { %2082 = vmatmul.mubr.msk.bf16.vlgmr.msra.gmra.mrb[20].mxu1 %vm1207_vm4, %v1325_v28 }
 0x3fd   : > { %v1266_v31 = vmul.f32 1.442695, %v1259_v42  ;;  %2092 = vmatpush3.bf16.msra.mxu1 %v1471_v29  ;;  %2093 = vmatprep.mubr.msk.bf16.mxu1 %vm2433_vm0, %v2429_v20  ;;  %v1298_v42 = vld [vmem:[#allocation7 + $0x10] sm:$0xff] }
 0x3ff   : > { %2245 = vpow2.f32 %v1266_v31 }
 0x400   : > { %2247 = vpow2.f32 %v1228_v30  ;;  %v2235_v30 = vld [vmem:[#allocation13 + $0x20] sm:$0xff]  }
 0x401   : > { %v2244_v33 = vpop.eup %2243  ;;  %2249 = vpow2.f32 %v1232_v50 }
 0x402   : > { %v1282_v34 = vsel %vm1207_vm4, %v2244_v33, 0.0  ;;  %v1326_v35 = vpack.c.bf16 %v2244_v33, %v2244_v33  ;;  %2251 = vpow2.f32 %v1234_v55 }
 0x403   : > { %1283 = vadd.xlane.f32.xlu0 %v1282_v34  ;;  %2253 = vpow2.f32 %v1230_v4 }
 0x404   : > { %2088 = vmatmul.mubr.msk.bf16.vlgmr.msra.gmra.mrb[8].mxu0 %vm1207_vm4, %v1326_v35  ;;  %v2236_v35 = vld [vmem:[#allocation13 + $0x28] sm:$0xff]  }
 0x405   : > { %2113 = vmatprep.mubr.msk.bf16.mxu0 %vm2433_vm0, %v2429_v20  ;;  %2098 = vmatpush3.bf16.msra.mxu0 %v2231_v11 }
 0x406   : > { %2099 = vmatprep.subr.bf16.mxu0 %v2429_v20 }
 0x409   : > { %v2246_v26 = vpop.eup %2245  ;;  %2100 = vmatpush3.bf16.msra.mxu0 %v2232_v15 }
 0x40a   : > { %v1285_v58 = vsel %vm1207_vm4, %v2246_v26, 0.0  ;;  %v1327_v63 = vpack.c.bf16 %v2246_v26, %v2246_v26  ;;  %v2248_v1 = vpop.eup %2247  ;;  %2101 = vmatprep.subr.bf16.mxu0 %v2429_v20 }
 0x40b   : > { %1286 = vadd.xlane.f32.xlu0 %v1285_v58  ;;  %v2250_v3 = vpop.eup %2249  ;;  %v1272_v38 = vmul.f32 %v2248_v1, %v1268_v36  ;;  %v1299_v58 = vld [vmem:[#allocation7 + $0x18] sm:$0xff] }
 0x40c   : > { %2094 = vmatmul.mubr.msk.bf16.vlgmr.msra.gmra.mrb[24].mxu1 %vm1207_vm4, %v1327_v63  ;;  %1302 = vperm.xlu1 %2197, %v2248_v1   ;;  %v2252_v7 = vpop.eup %2251  ;;  %v1274_v61 = vmul.f32 %v2250_v3, %v1270_v59 }
 0x40d   : > { %v2254_v10 = vpop.eup %2253  ;;  %v1275_v53 = vmul.f32 %v2252_v7, %v1271_v51  ;;  %2102 = vmatpush3.bf16.msra.mxu0 %v2233_v21 }
 0x40e   : > { %v1273_v43 = vmul.f32 %v2254_v10, %v1269_v41  ;;  %2103 = vmatprep.subr.bf16.mxu0 %v2429_v20 }
 0x410   : > { %1312 = vperm.xlu1 %2197, %v2250_v3  }
 0x411   : > { %2104 = vmatpush3.bf16.msra.mxu0 %v2234_v25 }
 0x412   : > { %2105 = vmatprep.subr.bf16.mxu0 %v2429_v20 }
 0x414   : > { %1317 = vperm.xlu1 %2197, %v2252_v7  }
 0x415   : > { %2106 = vmatpush3.bf16.msra.mxu0 %v2235_v30 }
 0x416   : > { %2107 = vmatprep.subr.bf16.mxu0 %v2429_v20 }
 0x419   : > { %2108 = vmatpush3.bf16.msra.mxu0 %v2236_v35 }
 0x41a   : > { %2109 = vmatprep.subr.bf16.mxu0 %v2429_v20 }
 0x421   : > { %1307 = vperm.xlu0 %2198, %v2254_v10  }
 0x480   : > { %v1278_v39 = vpop.xlane.xlu0 %1277 }
 0x481   : > { %v1288_v40 = vadd.f32 %v1278_v39, %v1272_v38 }
 0x483   : > { %1292 = vst.msk [vmem:[#allocation6] sm:$0xff] %vm997_vm3, %v1288_v40 }
 0x488   : > { %v1281_v44 = vpop.xlane.xlu1 %1280 }
 0x489   : > { %v1289_v45 = vadd.f32 %v1281_v44, %v1273_v43 }
 0x48a   : > { %v1529_v46 = vld [vmem:[#allocation6] sm:$0xff] }
 0x48b   : > { %1293 = vst.msk [vmem:[#allocation6 + $0x8] sm:$0xff] %vm997_vm3, %v1289_v45  ;;  %2255 = vrcp.f32 %v1529_v46 }
 0x48c   : > { %v1303_v8 = vpop.permute.xlu1 %1302 }
 0x48d   : > { %v1320_v9 = vmul.f32 %v1303_v8, %v1296_v6  ;;  %v2237_v8 = vld [vmem:[#allocation13 + $0x30] sm:$0xff]  }
 0x48e   : > { %2110 = vmatpush3.bf16.msra.mxu0 %v2237_v8 }
 0x48f   : > { %2111 = vmatprep.subr.bf16.mxu0 %v2429_v20 }
 0x490   : > { %v1284_v62 = vpop.xlane.xlu0 %1283  ;;  %v1313_v29 = vpop.permute.xlu1 %1312 }
 0x491   : > { %v1290_v47 = vadd.f32 %v1284_v62, %v1274_v61  ;;  %v1322_v31 = vmul.f32 %v1313_v29, %v1298_v42 }
 0x492   : > { %v1530_v48 = vld [vmem:[#allocation6 + $0x8] sm:$0xff] }
 0x493   : > { %1294 = vst.msk [vmem:[#allocation6 + $0x10] sm:$0xff] %vm997_vm3, %v1290_v47  ;;  %2257 = vrcp.f32 %v1530_v48 }
 0x494   : > { %v1318_v63 = vpop.permute.xlu1 %1317 }
 0x495   : > { %v2256_v52 = vpop.eup %2255  ;;  %v1323_v1 = vmul.f32 %v1318_v63, %v1299_v58  ;;  %v1982_v63 = vld [vmem:[%s2983_s4] ss:$0 sm:$0xff] }
 0x496   : > { %1539 = vperm.xlu0 %2198, %v2256_v52  }
 0x498   : > { %v1287_v54 = vpop.xlane.xlu0 %1286 }
 0x499   : > { %v1291_v23 = vadd.f32 %v1287_v54, %v1275_v53 }
 0x49a   : > { %v1531_v57 = vld [vmem:[#allocation6 + $0x10] sm:$0xff] }
 0x49b   : > { %1295 = vst.msk [vmem:[#allocation6 + $0x18] sm:$0xff] %vm997_vm3, %v1291_v23  ;;  %2259 = vrcp.f32 %v1531_v57 }
 0x49d   : > { %v2258_v60 = vpop.eup %2257 }
 0x49e   : > { %1544 = vperm.xlu1 %2197, %v2258_v60  }
 0x4a0   : > { %v1308_v19 = vpop.permute.xlu0 %1307 }
 0x4a1   : > { %v1321_v32 = vmul.f32 %v1308_v19, %v1297_v18  ;;  %v2238_v18 = vld [vmem:[#allocation13 + $0x38] sm:$0xff]  }
 0x4a2   : > { %v1532_v0 = vld [vmem:[#allocation6 + $0x18] sm:$0xff]  ;;  %2112 = vmatpush3.bf16.msra.mxu0 %v2238_v18 }
 0x4a3   : > { %2261 = vrcp.f32 %v1532_v0 }
 0x4a5   : > { %v2260_v2 = vpop.eup %2259 }
 0x4a6   : > { %1549 = vperm.xlu0 %2198, %v2260_v2  }
 0x4ad   : > { %v2262_v5 = vpop.eup %2261 }
 0x4ae   : > { %1554 = vperm.xlu1 %2197, %v2262_v5  }
 0x4c7   : > { %v1369_v12 = vpop.f32.mrb[4].mxu0 }
 0x4c8   : > { %v1513_v13 = vadd.f32 %v1369_v12, %v1320_v9  ;;  %v2077_v14 = vpop.f32.mrb[5].mxu0 }
 0x4c9   : > { %v1372_v16 = vpop.f32.mrb[6].mxu0 }
 0x4ca   : > { %1517 = vst.msk [vmem:[#allocation7] sm:$0xff] %vm1006_vm1, %v1513_v13  ;;  %v2078_v17 = vpop.f32.mrb[7].mxu0 }
 0x4cf   : > { %v1415_v22 = vpop.f32.mrb[20].mxu1 }
 0x4d0   : > { %v1514_v37 = vadd.f32 %v1415_v22, %v1321_v32  ;;  %v2083_v24 = vpop.f32.mrb[21].mxu1 }
 0x4d1   : > { %v1418_v27 = vpop.f32.mrb[22].mxu1  ;;  %v1525_v44 = vld [vmem:[#allocation7] sm:$0xff] }
 0x4d2   : > { %1518 = vst.msk [vmem:[#allocation7 + $0x8] sm:$0xff] %vm1006_vm1, %v1514_v37  ;;  %v2084_v28 = vpop.f32.mrb[23].mxu1 }
 0x4d7   : > { %v1461_v33 = vpop.f32.mrb[8].mxu0 }
 0x4d8   : > { %v1515_v50 = vadd.f32 %v1461_v33, %v1322_v31  ;;  %v2089_v34 = vpop.f32.mrb[9].mxu0 }
 0x4d9   : > { %v1464_v55 = vpop.f32.mrb[10].mxu0  ;;  %v1526_v46 = vld [vmem:[#allocation7 + $0x8] sm:$0xff] }
 0x4da   : > { %1519 = vst.msk [vmem:[#allocation7 + $0x10] sm:$0xff] %vm1006_vm1, %v1515_v50  ;;  %v2090_v26 = vpop.f32.mrb[11].mxu0 }
 0x4df   : > { %v1507_v3 = vpop.f32.mrb[24].mxu1 }
 0x4e0   : > { %v1516_v4 = vadd.f32 %v1507_v3, %v1323_v1  ;;  %v2095_v7 = vpop.f32.mrb[25].mxu1 }
 0x4e1   : > { %v1510_v10 = vpop.f32.mrb[26].mxu1  ;;  %v1527_v41 = vld [vmem:[#allocation7 + $0x10] sm:$0xff] }
 0x4e2   : > { %1520 = vst.msk [vmem:[#allocation7 + $0x18] sm:$0xff] %vm1006_vm1, %v1516_v4  ;;  %v2096_v36 = vpop.f32.mrb[27].mxu1 }
 0x4e9   : > { %v1528_v61 = vld [vmem:[#allocation7 + $0x18] sm:$0xff] }
 0x515   : > { %v1540_v38 = vpop.permute.xlu0 %1539 }
 0x516   : > { %v1557_v45 = vmul.f32 %v1540_v38, %v1525_v44 }
 0x51d   : > { %v1545_v40 = vpop.permute.xlu1 %1544 }
 0x51e   : > { %v1558_v62 = vmul.f32 %v1545_v40, %v1526_v46 }
 0x525   : > { %v1550_v39 = vpop.permute.xlu0 %1549 }
 0x526   : > { %v1559_v43 = vmul.f32 %v1550_v39, %v1527_v41 }
 0x528   : > { %v1561_v47 = vcombine.low %v1557_v45, %v1559_v43  ;;  %v1562_v48 = vcombine.high %v1557_v45, %v1559_v43 }
 0x52a   : > { %v1569_v54 = vrot.slane %v1561_v47, %v2696_v49  ;;  %v1576_v23 = vrot.slane %v1562_v48, %v2696_v49 }
 0x52d   : > { %v1555_v59 = vpop.permute.xlu1 %1554 }
 0x52e   : > { %v1560_v51 = vmul.f32 %v1555_v59, %v1528_v61 }
 0x530   : > { %v1577_v52 = vcombine.low %v1558_v62, %v1560_v51  ;;  %v1578_v53 = vcombine.high %v1558_v62, %v1560_v51 }
 0x532   : > { %v1585_v57 = vrot.slane %v1577_v52, %v2696_v49  ;;  %v1592_v60 = vrot.slane %v1578_v53, %v2696_v49 }
 0x534   : > { %v1593_v0 = vcombine.low %v1569_v54, %v1585_v57  ;;  %v1594_v2 = vcombine.high %v1569_v54, %v1585_v57  ;;  %v1609_v5 = vcombine.low %v1576_v23, %v1592_v60  ;;  %v1610_v6 = vcombine.high %v1576_v23, %v1592_v60 }
 0x536   : > { %v1601_v9 = vrot.slane %v1593_v0, %v2699_v56  ;;  %v1608_v11 = vrot.slane %v1594_v2, %v2699_v56  ;;  %v1617_v12 = vrot.slane %v1609_v5, %v2699_v56  ;;  %v1624_v13 = vrot.slane %v1610_v6, %v2699_v56 }
 0x538   : > { %v1629_v14 = vcombine.low %v1601_v9, %v1608_v11  ;;  %v1980_v15 = vcombine.high %v1601_v9, %v1608_v11  ;;  %v1645_v16 = vcombine.low %v1617_v12, %v1624_v13  ;;  %v1981_v17 = vcombine.high %v1617_v12, %v1624_v13 }
 0x53a   : > { %v1636_v19 = vrot.slane %v1629_v14, %v2696_v49  ;;  %v1644_v21 = vrot.slane %v1980_v15, %v2696_v49  ;;  %v1652_v32 = vrot.slane %v1645_v16, %v2696_v49  ;;  %v1660_v22 = vrot.slane %v1981_v17, %v2696_v49 }
 0x53c   : > { %v1662_v37 = vcombine.high %v1636_v19, %v1644_v21  ;;  %v1678_v24 = vcombine.high %v1652_v32, %v1660_v22  ;;  %v1661_v25 = vcombine.low %v1636_v19, %v1644_v21  ;;  %v1677_v27 = vcombine.low %v1652_v32, %v1660_v22 }
 0x53e   : > { %v1676_v28 = vrot.slane %v1662_v37, %v2699_v56  ;;  %v1692_v42 = vrot.slane %v1678_v24, %v2699_v56  ;;  %v1669_v20 = vrot.slane %v1661_v25, %v2699_v56  ;;  %v1685_v29 = vrot.slane %v1677_v27, %v2699_v56 }
 0x540   : > { %v1695_v30 = vcombine.low %v1676_v28, %v1692_v42  ;;  %v1694_v31 = vcombine.high %v1669_v20, %v1685_v29  ;;  %v1693_v33 = vcombine.low %v1669_v20, %v1685_v29  ;;  %v1696_v49 = vcombine.high %v1676_v28, %v1692_v42 }
 0x542   : > { %1702 = vrot.lane.b32.xlu1 %v1695_v30, %s2432_s12  ;;  %1698 = vrot.lane.b32.xlu0 %v1694_v31, %s2430_s10 }
 0x546   : > { %1706 = vrot.lane.b32.xlu0 %v1696_v49, %s2431_s28 }
 0x5b4   : > { %v1699_v50 = vpop.permute.xlu0 %1698  ;;  %v1703_v34 = vpop.permute.xlu1 %1702 }
 0x5b5   : > { %v1709_v35 = vsel %vm1006_vm1, %v1693_v33, %v1699_v50 }
 0x5b6   : > { %v1711_v56 = vsel %vm1710_vm6, %v1709_v35, %v1703_v34 }
 0x5b8   : > { %v1707_v55 = vpop.permute.xlu0 %1706 }
 0x5b9   : > { %v1713_v26 = vsel %vm1712_vm7, %v1711_v56, %v1707_v55 }
 0x5ba   : > { %v1714_v58 = vpack.c.bf16 %v1713_v26, %v1713_v26 }
 0x5bc   : > { %2114 = vmatmul.mubr.bf16.vlgmr.msra.gmra.mrb[12].mxu0 %v1714_v58 }
 0x68f   : > { %v1820_v1 = vpop.f32.mrb[12].mxu0 }
 0x690   : > { %v1821_v3 = vadd.f32 %v1982_v63, %v1820_v1  ;;  %v2115_v4 = vpop.f32.mrb[13].mxu0 }
 0x691   : > { %v1823_v7 = vpop.f32.mrb[14].mxu0 }
 0x692   : > { %1826 = vst [vmem:[%s268_s29] sm:$0xff] %v1821_v3  ;;  %v2116_v10 = vpop.f32.mrb[15].mxu0 }
 0x693   : > { %2362 = shalt.err (!%p2359_p2)
}
 0x694   : > { %s2363_s14 = scalar_lea.hbm %s2935_s17, 128  ;;  %s2367_s12 = scalar_lea.hbm %s2984_s5, 256 }
 0x695   : > { %p2364_p13 = scmp.ne.s32.totalorder %s2935_s17, %s2363_s14  ;;  %p2368_p4 = scmp.lt.u32.totalorder %s2935_s17, %s2984_s5 }
 0x696   : > { %p2369_p7 = scmp.lt.u32.totalorder %s2367_s12, %s2363_s14  ;;  %p2371_p11 = scmp.lt.u32.totalorder %s2363_s14, %s2935_s17 }
 0x697   : > { %p2365_p6 = pnand %p2364_p13, %p2998_p0 }
 0x698   : > { %p2370_p8 = por %p2369_p7, %p2368_p4 }
 0x699   : > { %p2366_p10 = pneg %p2365_p6 }
 0x69a   : > { %p2372_p1 = por %p2371_p11, %p2370_p8 }
 0x69c   : > { %p2373_p3 = pnand %p2372_p1, %p2366_p10 }
 0x69e   : > { %2376 = shalt.err (!%p2373_p3)
}
 0x69f   : > { %2127 = dma.vmem_to_hbm [thread:$0]  (%p2998_p0), %s2937_s8, 128, %s2935_s17, %s1828_s22  }
 0x6a0 PF: > { %s1853_s6 = sand.u32 1, %s2407_s18   ;;  %p2999_p5 = scmp.ne.s32.totalorder %s2989_s25, 0 }
 0x6a1   : > { %p3000_p9 = scmp.ge.s32.totalorder %s2419_s21, 2  ;;  %s1854_s29 = scalar_lea.sflag [#allocation10], %s1853_s6 }
 0x6a3   : > { %p2141_p12 = pnand %p3000_p9, %p2999_p5 }
 0x6a5   : > { %2402 = dma.done.wait (!%p2141_p12), %s1854_s29, 128  }
 0x6a6   : > { %2404 = vsyncadd (!%p2141_p12), %s1854_s29, 4294967168  ;;  %p19_p2 = scmp.ge.s32.totalorder %s2578_s16, 4   ;;  %s3001_s18 = smov %s2411_s19 }
 0x6a7   : > { %s3002_s19 = smov %s2415_s20  ;;  %s3003_s20 = smov %s2587_s27 }
 0x6a8   : > { %s3004_s21 = smov %s2578_s16  ;;  %21 = sbr.rel (!%p19_p2) target bundleno = 6 (0x6), region = 93 }
 0x6af   :  { %1859 = vsyncpa [#allocation9], 1 }
 0x6b0   :  { %1861 = vsyncpa [#allocation9 + $0x1], 1 }
 0x6b1   :  { %1862 = vsyncpa [#allocation12], 1 }
 0x6b2   :  { %1863 = vsyncpa [#allocation10], 1 }
 0x6b3   :  { %1865 = vsyncpa [#allocation10 + $0x1], 1 }

</bundles_post_ra>
